<compile_context>
chip_gen: v6e
topology: v6e:2x2x1
jax: 0.10.0
libtpu: 0.0.40
codegen_flags: <defaults>
</compile_context>

<pallas_src>
import math

import jax
import jax.numpy as jnp
from jax import lax
from jax.experimental import pallas as pl
from jax.experimental.pallas import tpu as pltpu

EPSILON = 1e-8  # matches vcsmc.utils EPSILON

_NT_DIMS = (((1,), (1,)), ((), ()))  # contract last dims of both operands: A @ B^T


def _hyperbolic_kernel(scale_ref, v1_ref, v2_ref, out_ref):
    v1 = v1_ref[...].astype(jnp.float32)   # (TV, D)
    v2 = v2_ref[...].astype(jnp.float32)   # (TV, D)
    D = v1.shape[-1]

    # Lane-dense per-row reductions on the MXU: (8, D) @ (TV, D)^T -> (8, TV).
    # All 8 result rows are identical; an (8, TV) array costs the same vregs as
    # (1, TV) and avoids any M=1 matmul edge case.
    ones = jnp.ones((8, D), jnp.float32)
    hp = lax.Precision.HIGHEST
    n1_sq = lax.dot_general(ones, v1 * v1, _NT_DIMS, precision=hp,
                            preferred_element_type=jnp.float32)   # |v1|^2 per row
    n2_sq = lax.dot_general(ones, v2 * v2, _NT_DIMS, precision=hp,
                            preferred_element_type=jnp.float32)   # |v2|^2 per row
    d12 = lax.dot_general(ones, v1 * v2, _NT_DIMS, precision=hp,
                          preferred_element_type=jnp.float32)     # <v1, v2> per row

    # normalize(): n(v) = v * f,  f = sqrt(1 - exp(-|v|^2) + EPS) / (sqrt(|v|^2+EPS) + EPS)
    a1 = 1.0 - jnp.exp(-n1_sq) + EPSILON
    a2 = 1.0 - jnp.exp(-n2_sq) + EPSILON
    r1 = 1.0 / (jnp.sqrt(n1_sq + EPSILON) + EPSILON)
    r2 = 1.0 / (jnp.sqrt(n2_sq + EPSILON) + EPSILON)

    # |n(v1) - n(v2)|^2 expanded; normalized vectors never materialized.
    xy_norm_sq = (a1 * (r1 * r1)) * n1_sq + (a2 * (r2 * r2)) * n2_sq \
        - 2.0 * (jnp.sqrt(a1 * a2) * (r1 * r2)) * d12
    xy_norm_sq = jnp.maximum(xy_norm_sq, 0.0)   # guard fp cancellation

    # delta = 2 * |n1-n2|^2 * exp(|v1|^2) * exp(|v2|^2)   (exponentials fused)
    x = 2.0 * xy_norm_sq * jnp.exp(n1_sq + n2_sq) + 10.0 * EPSILON
    # acosh(1 + x) = log(1 + x + sqrt(x*(x+2)))  -- cancellation-free
    dist = jnp.log(1.0 + (x + jnp.sqrt(x * (x + 2.0))))

    out_ref[...] = (dist[0:1, :] * scale_ref[0])    # lane-dense (1, TV) store


def _row_tile(V: int, D: int, bytes_per_elem: int = 4,
              vmem_budget_bytes: int = 4 * 1024 * 1024) -> int:
    """Largest row tile s.t. 2 inputs x 2 pipeline buffers fit the VMEM budget."""
    per_row = 2 * 2 * D * bytes_per_elem
    max_rows = max(128, (vmem_budget_bytes // per_row) // 128 * 128)
    return V if V <= max_rows else max_rows


def hyperbolic_distance(v1_VxD, v2_VxD, log_scale):
    """Pallas-backed Hyperbolic.forward. Returns a (V,) float32 tensor."""
    assert v1_VxD.shape == v2_VxD.shape and v1_VxD.ndim == 2
    V, D = v1_VxD.shape

    # bf16 stays bf16 in HBM (halves DMA traffic for this memory-bound kernel);
    # anything else goes to f32. Kernel math is always f32.
    def _hbm(x):
        return x if x.dtype in (jnp.bfloat16, jnp.float32) else x.astype(jnp.float32)

    v1 = _hbm(v1_VxD)
    v2 = _hbm(v2_VxD)

    itemsize = max(jnp.dtype(v1.dtype).itemsize, jnp.dtype(v2.dtype).itemsize)
    TV = _row_tile(V, D, itemsize)
    num_blocks = pl.cdiv(V, TV)   # ragged last block handled by Pallas padding

    scale = jnp.exp(jnp.asarray([log_scale], dtype=jnp.float32))  # (1,) SMEM scalar

    out = pl.pallas_call(
        _hyperbolic_kernel,
        out_shape=jax.ShapeDtypeStruct((num_blocks, TV), jnp.float32),
        grid=(num_blocks,),
        in_specs=[
            pl.BlockSpec(memory_space=pltpu.MemorySpace.SMEM),   # scale
            pl.BlockSpec((TV, D), lambda i: (i, 0)),             # v1 row tile
            pl.BlockSpec((TV, D), lambda i: (i, 0)),             # v2 row tile
        ],
        out_specs=pl.BlockSpec((1, TV), lambda i: (i, 0)),
        compiler_params=pltpu.CompilerParams(
            dimension_semantics=("parallel",),
            vmem_limit_bytes=32 * 1024 * 1024,
        ),
    )(scale, v1, v2)

    return out.reshape(-1)[:V]


def _reference(v1, v2, log_scale):
    """Pure-JAX reference mirroring the PyTorch module."""
    def normalize(v):
        n_sq = jnp.sum(v * v, axis=-1)
        n = jnp.sqrt(n_sq + EPSILON)
        new_n = jnp.sqrt(1.0 - jnp.exp(-n_sq) + EPSILON)
        unit = v / (n[:, None] + EPSILON)
        return unit * new_n[:, None]

    n1 = normalize(v1)
    n2 = normalize(v2)
    xy_sq = jnp.sum((n1 - n2) ** 2, axis=-1)
    delta = 2.0 * xy_sq * jnp.exp(jnp.sum(v1 * v1, -1)) * jnp.exp(jnp.sum(v2 * v2, -1))
    return jnp.arccosh(1.0 + delta + EPSILON * 10.0) * jnp.exp(log_scale)


if __name__ == "__main__":
    # Deterministic parameter init: log_scale = log(initial_scale), initial_scale = 0.1
    initial_scale = 0.1
    log_scale = math.log(initial_scale)

    V, D = 256, 32  # small (V, D) consistent with the module's forward
    key = jax.random.PRNGKey(0)
    k1, k2 = jax.random.split(key)
    v1 = jax.random.normal(k1, (V, D), dtype=jnp.float32) * 0.3
    v2 = jax.random.normal(k2, (V, D), dtype=jnp.float32) * 0.3

    out = hyperbolic_distance(v1, v2, log_scale)
    out = jax.block_until_ready(out)

    ref = _reference(v1, v2, log_scale)
    assert out.shape == (V,)
    assert jnp.allclose(out, ref, rtol=1e-5, atol=1e-5), (out, ref)

    print("KERNEL_OK")
</pallas_src>

<mosaic_0001>
module attributes {stable_mosaic.version = 11 : i64} {
  func.func @_hyperbolic_kernel(%arg0: i32, %arg1: memref<1xf32, #tpu.memory_space<smem>>, %arg2: memref<256x32xf32, #tpu.memory_space<vmem>>, %arg3: memref<256x32xf32, #tpu.memory_space<vmem>>, %arg4: memref<1x256xf32, #tpu.memory_space<vmem>>) attributes {dimension_semantics = [#tpu.dimension_semantics<parallel>], iteration_bounds = array<i64: 1>, scalar_prefetch = 0 : i64, scratch_operands = 0 : i64, tpu.core_type = #tpu.core_type<tc>, window_params = [{transform_indices = @transform_0, window_bounds = array<i64: 1>}, {transform_indices = @transform_1, window_bounds = array<i64: 256, 32>}, {transform_indices = @transform_2, window_bounds = array<i64: 256, 32>}, {transform_indices = @transform_3, window_bounds = array<i64: 1, 256>}]} {
    %c0 = arith.constant 0 : index
    %c0_0 = arith.constant 0 : index
    %0 = vector.load %arg2[%c0, %c0_0] : memref<256x32xf32, #tpu.memory_space<vmem>>, vector<256x32xf32>
    %c0_1 = arith.constant 0 : index
    %c0_2 = arith.constant 0 : index
    %1 = vector.load %arg3[%c0_1, %c0_2] : memref<256x32xf32, #tpu.memory_space<vmem>>, vector<256x32xf32>
    %cst = arith.constant 1.000000e+00 : f32
    %2 = vector.broadcast %cst : f32 to vector<8x32xf32>
    %3 = arith.mulf %0, %0 : vector<256x32xf32>
    %cst_3 = arith.constant dense<0.000000e+00> : vector<8x256xf32>
    %4 = tpu.matmul %2, %3, %cst_3 {dimension_numbers = #tpu.dot_dimension_numbers<[1], [1], [0], [0], [0, 0, 1, 0], [], []>, precision = #tpu.contract_precision<fp32>} : vector<8x32xf32>, vector<256x32xf32>, vector<8x256xf32> -> vector<8x256xf32>
    %5 = arith.mulf %1, %1 : vector<256x32xf32>
    %cst_4 = arith.constant dense<0.000000e+00> : vector<8x256xf32>
    %6 = tpu.matmul %2, %5, %cst_4 {dimension_numbers = #tpu.dot_dimension_numbers<[1], [1], [0], [0], [0, 0, 1, 0], [], []>, precision = #tpu.contract_precision<fp32>} : vector<8x32xf32>, vector<256x32xf32>, vector<8x256xf32> -> vector<8x256xf32>
    %7 = arith.mulf %0, %1 : vector<256x32xf32>
    %cst_5 = arith.constant dense<0.000000e+00> : vector<8x256xf32>
    %8 = tpu.matmul %2, %7, %cst_5 {dimension_numbers = #tpu.dot_dimension_numbers<[1], [1], [0], [0], [0, 0, 1, 0], [], []>, precision = #tpu.contract_precision<fp32>} : vector<8x32xf32>, vector<256x32xf32>, vector<8x256xf32> -> vector<8x256xf32>
    %cst_6 = arith.constant 0.000000e+00 : f32
    %9 = vector.broadcast %cst_6 : f32 to vector<8x256xf32>
    %10 = arith.subf %9, %4 : vector<8x256xf32>
    %11 = math.exp %10 : vector<8x256xf32>
    %cst_7 = arith.constant 1.000000e+00 : f32
    %12 = vector.broadcast %cst_7 : f32 to vector<8x256xf32>
    %13 = arith.subf %12, %11 : vector<8x256xf32>
    %cst_8 = arith.constant 9.99999993E-9 : f32
    %14 = vector.broadcast %cst_8 : f32 to vector<8x256xf32>
    %15 = arith.addf %13, %14 : vector<8x256xf32>
    %cst_9 = arith.constant 0.000000e+00 : f32
    %16 = vector.broadcast %cst_9 : f32 to vector<8x256xf32>
    %17 = arith.subf %16, %6 : vector<8x256xf32>
    %18 = math.exp %17 : vector<8x256xf32>
    %cst_10 = arith.constant 1.000000e+00 : f32
    %19 = vector.broadcast %cst_10 : f32 to vector<8x256xf32>
    %20 = arith.subf %19, %18 : vector<8x256xf32>
    %cst_11 = arith.constant 9.99999993E-9 : f32
    %21 = vector.broadcast %cst_11 : f32 to vector<8x256xf32>
    %22 = arith.addf %20, %21 : vector<8x256xf32>
    %cst_12 = arith.constant 9.99999993E-9 : f32
    %23 = vector.broadcast %cst_12 : f32 to vector<8x256xf32>
    %24 = arith.addf %4, %23 : vector<8x256xf32>
    %25 = math.sqrt %24 : vector<8x256xf32>
    %cst_13 = arith.constant 9.99999993E-9 : f32
    %26 = vector.broadcast %cst_13 : f32 to vector<8x256xf32>
    %27 = arith.addf %25, %26 : vector<8x256xf32>
    %cst_14 = arith.constant 1.000000e+00 : f32
    %28 = vector.broadcast %cst_14 : f32 to vector<8x256xf32>
    %29 = arith.divf %28, %27 : vector<8x256xf32>
    %cst_15 = arith.constant 9.99999993E-9 : f32
    %30 = vector.broadcast %cst_15 : f32 to vector<8x256xf32>
    %31 = arith.addf %6, %30 : vector<8x256xf32>
    %32 = math.sqrt %31 : vector<8x256xf32>
    %cst_16 = arith.constant 9.99999993E-9 : f32
    %33 = vector.broadcast %cst_16 : f32 to vector<8x256xf32>
    %34 = arith.addf %32, %33 : vector<8x256xf32>
    %cst_17 = arith.constant 1.000000e+00 : f32
    %35 = vector.broadcast %cst_17 : f32 to vector<8x256xf32>
    %36 = arith.divf %35, %34 : vector<8x256xf32>
    %37 = arith.mulf %29, %29 : vector<8x256xf32>
    %38 = arith.mulf %15, %37 : vector<8x256xf32>
    %39 = arith.mulf %38, %4 : vector<8x256xf32>
    %40 = arith.mulf %36, %36 : vector<8x256xf32>
    %41 = arith.mulf %22, %40 : vector<8x256xf32>
    %42 = arith.mulf %41, %6 : vector<8x256xf32>
    %43 = arith.addf %39, %42 : vector<8x256xf32>
    %44 = arith.mulf %15, %22 : vector<8x256xf32>
    %45 = math.sqrt %44 : vector<8x256xf32>
    %46 = arith.mulf %29, %36 : vector<8x256xf32>
    %47 = arith.mulf %45, %46 : vector<8x256xf32>
    %cst_18 = arith.constant 2.000000e+00 : f32
    %48 = vector.broadcast %cst_18 : f32 to vector<8x256xf32>
    %49 = arith.mulf %48, %47 : vector<8x256xf32>
    %50 = arith.mulf %49, %8 : vector<8x256xf32>
    %51 = arith.subf %43, %50 : vector<8x256xf32>
    %cst_19 = arith.constant 0.000000e+00 : f32
    %52 = vector.broadcast %cst_19 : f32 to vector<8x256xf32>
    %53 = arith.maximumf %51, %52 : vector<8x256xf32>
    %cst_20 = arith.constant 2.000000e+00 : f32
    %54 = vector.broadcast %cst_20 : f32 to vector<8x256xf32>
    %55 = arith.mulf %54, %53 : vector<8x256xf32>
    %56 = arith.addf %4, %6 : vector<8x256xf32>
    %57 = math.exp %56 : vector<8x256xf32>
    %58 = arith.mulf %55, %57 : vector<8x256xf32>
    %cst_21 = arith.constant 1.000000e-07 : f32
    %59 = vector.broadcast %cst_21 : f32 to vector<8x256xf32>
    %60 = arith.addf %58, %59 : vector<8x256xf32>
    %cst_22 = arith.constant 2.000000e+00 : f32
    %61 = vector.broadcast %cst_22 : f32 to vector<8x256xf32>
    %62 = arith.addf %60, %61 : vector<8x256xf32>
    %63 = arith.mulf %60, %62 : vector<8x256xf32>
    %64 = math.sqrt %63 : vector<8x256xf32>
    %65 = arith.addf %60, %64 : vector<8x256xf32>
    %cst_23 = arith.constant 1.000000e+00 : f32
    %66 = vector.broadcast %cst_23 : f32 to vector<8x256xf32>
    %67 = arith.addf %66, %65 : vector<8x256xf32>
    %68 = math.log %67 : vector<8x256xf32>
    %69 = vector.extract_strided_slice %68 {offsets = [0, 0], sizes = [1, 256], strides = [1, 1]} : vector<8x256xf32> to vector<1x256xf32>
    %c0_24 = arith.constant 0 : index
    %70 = memref.load %arg1[%c0_24] : memref<1xf32, #tpu.memory_space<smem>>
    %71 = vector.broadcast %70 : f32 to vector<1x256xf32>
    %72 = arith.mulf %69, %71 : vector<1x256xf32>
    %c0_25 = arith.constant 0 : index
    %c0_26 = arith.constant 0 : index
    %73 = vector.load %arg4[%c0_25, %c0_26] : memref<1x256xf32, #tpu.memory_space<vmem>>, vector<1x256xf32>
    tpu.vector_store %arg4[%c0_25, %c0_26], %72 {strides = array<i32>} : memref<1x256xf32, #tpu.memory_space<vmem>>, vector<1x256xf32>,
    return
  }
  func.func @transform_0(%arg0: i32) -> i32 {
    %c0_i32 = arith.constant 0 : i32
    %c0_i32_0 = arith.constant 0 : i32
    return %c0_i32 : i32
  }
  func.func @transform_1(%arg0: i32) -> (i32, i32) {
    %c0_i32 = arith.constant 0 : i32
    %c0_i32_0 = arith.constant 0 : i32
    return %arg0, %c0_i32 : i32, i32
  }
  func.func @transform_2(%arg0: i32) -> (i32, i32) {
    %c0_i32 = arith.constant 0 : i32
    %c0_i32_0 = arith.constant 0 : i32
    return %arg0, %c0_i32 : i32, i32
  }
  func.func @transform_3(%arg0: i32) -> (i32, i32) {
    %c0_i32 = arith.constant 0 : i32
    %c0_i32_0 = arith.constant 0 : i32
    return %arg0, %c0_i32 : i32, i32
  }
}

</mosaic_0001>

<bundles_post_ra>
// kernel: tpu_custom_call.1
= control target key start
LH: loop header
LB: loop body
LE: loop exit
PB: predicated region body
PF: predicated region fallthrough
CT: control target
= control target key end

     0   :  { %vm112_vm0 = vcmask 261120   ;;  %v6081_v9 = vmov 1.0   ;;  %s6059_s0 = inlined_call_operand.<no memory space> [shape: f32[1], index: 0, kind: input, shape index: {}]   ;;  %s6060_s1 = inlined_call_operand.vmem [shape: f32[256,32], index: 1, kind: input, shape index: {}]   ;;  %s6061_s2 = inlined_call_operand.vmem [shape: f32[256,32], index: 2, kind: input, shape index: {}]   ;;  %s6062_s3 = inlined_call_operand.hbm [shape: f32[1,256], index: 3, kind: output, shape index: {}]  }
   0x1   :  { %v47_v0 = vld [vmem:[%s6060_s1 + $0xf8] sm:$0xff]  ;;  %v46_v2 = vld [vmem:[%s6060_s1 + $0xf0] sm:$0xff]  ;;  %v45_v7 = vld [vmem:[%s6060_s1 + $0xe8] sm:$0xff]  ;;  %3293 = vmatprep.mubr.msk.f32.mxu1 %vm112_vm0, %v6081_v9 }
   0x2   :  { %v31_v1 = vld [vmem:[%s6060_s1 + $0x78] sm:$0xff]  ;;  %v111_v3 = vmul.f32 %v47_v0, %v47_v0  ;;  %v110_v5 = vmul.f32 %v46_v2, %v46_v2  ;;  %v30_v6 = vld [vmem:[%s6060_s1 + $0x70] sm:$0xff]  ;;  %v29_v8 = vld [vmem:[%s6060_s1 + $0x68] sm:$0xff]  ;;  %v109_v11 = vmul.f32 %v45_v7, %v45_v7 }
   0x3   :  { %v95_v4 = vmul.f32 %v31_v1, %v31_v1  ;;  %v94_v10 = vmul.f32 %v30_v6, %v30_v6  ;;  %v93_v12 = vmul.f32 %v29_v8, %v29_v8  ;;  %v44_v13 = vld [vmem:[%s6060_s1 + $0xe0] sm:$0xff]  ;;  %v43_v27 = vld [vmem:[%s6060_s1 + $0xd8] sm:$0xff]  ;;  %v42_v53 = vld [vmem:[%s6060_s1 + $0xd0] sm:$0xff] }
   0x4   :  { %v210_v14 = vsel %vm112_vm0, %v111_v3, 0  ;;  %v207_v16 = vsel %vm112_vm0, %v110_v5, 0  ;;  %v108_v17 = vmul.f32 %v44_v13, %v44_v13  ;;  %v28_v22 = vld [vmem:[%s6060_s1 + $0x60] sm:$0xff]  ;;  %v204_v24 = vsel %vm112_vm0, %v109_v11, 0  ;;  %v27_v32 = vld [vmem:[%s6060_s1 + $0x58] sm:$0xff]  ;;  %v26_v54 = vld [vmem:[%s6060_s1 + $0x50] sm:$0xff] }
   0x5   :  { %v162_v15 = vsel %vm112_vm0, %v95_v4, 0  ;;  %v3987_v18 = vand.u32 4294901760, %v210_v14  ;;  %v3991_v20 = vand.u32 4294901760, %v207_v16  ;;  %v159_v21 = vsel %vm112_vm0, %v94_v10, 0 }
   0x6   :  { %v3989_v19 = vand.u32 4294901760, %v162_v15  ;;  %v3997_v23 = vand.u32 4294901760, %v159_v21  ;;  %v156_v25 = vsel %vm112_vm0, %v93_v12, 0  ;;  %v201_v26 = vsel %vm112_vm0, %v108_v17, 0 }
   0x7   :  { %3227 = vmatprep.subr.mxu0 %v3987_v18  ;;  %v4006_v28 = vand.u32 4294901760, %v204_v24  ;;  %v4009_v29 = vsub.f32 %v210_v14, %v3987_v18  ;;  %v4011_v30 = vand.u32 4294901760, %v156_v25  ;;  %v4020_v33 = vand.u32 4294901760, %v201_v26 }
   0x8   :  { %v4014_v31 = vsub.f32 %v162_v15, %v3989_v19  ;;  %3228 = vmatpush3.xpose.msra.mxu0 %v3989_v19  ;;  %v4023_v34 = vsub.f32 %v207_v16, %v3991_v20  ;;  %v92_v35 = vmul.f32 %v28_v22, %v28_v22  ;;  %v4026_v36 = vsub.f32 %v159_v21, %v3997_v23 }
   0x9   :  { %3229 = vmatprep.subr.mxu0 %v3991_v20  ;;  %v6080_v37 = vand.u32 4294901760, %v4009_v29  ;;  %v107_v39 = vmul.f32 %v43_v27, %v43_v27  ;;  %v4032_v40 = vsub.f32 %v204_v24, %v4006_v28  ;;  %v91_v44 = vmul.f32 %v27_v32, %v27_v32 }
   0xa   :  { %v6079_v38 = vand.u32 4294901760, %v4014_v31  ;;  %v6077_v41 = vand.u32 4294901760, %v4023_v34  ;;  %v153_v42 = vsel %vm112_vm0, %v92_v35, 0  ;;  %v6075_v43 = vand.u32 4294901760, %v4026_v36 }
   0xb   :  { %v436_v45 = vsub.f32 %v4009_v29, %v6080_v37  ;;  %v4043_v47 = vand.u32 4294901760, %v153_v42  ;;  %v198_v48 = vsel %vm112_vm0, %v107_v39, 0  ;;  %v6073_v52 = vand.u32 4294901760, %v4032_v40 }
   0xc   :  { %v324_v46 = vsub.f32 %v4014_v31, %v6079_v38  ;;  %3230 = vmatpush3.xpose.msra.mxu0 %v3997_v23  ;;  %v443_v49 = vsub.f32 %v4023_v34, %v6077_v41  ;;  %v331_v50 = vsub.f32 %v4026_v36, %v6075_v43  ;;  %v4053_v51 = vand.u32 4294901760, %v198_v48 }
   0xd   :  { %9 = vsyncpa [#allocation4], 0  ;;  %3231 = vmatprep.subr.mxu0 %v4006_v28  ;;  %v437_v55 = vand.u32 4294901760, %v436_v45  ;;  %v150_v57 = vsel %vm112_vm0, %v91_v44, 0  ;;  %v4065_v58 = vsub.f32 %v156_v25, %v4011_v30  ;;  %v41_v59 = vld [vmem:[%s6060_s1 + $0xc8] sm:$0xff]  ;;  %v450_v62 = vsub.f32 %v4032_v40, %v6073_v52  ;;  %v40_v17 = vld [vmem:[%s6060_s1 + $0xc0] sm:$0xff] }
   0xe   :  { %v325_v56 = vand.u32 4294901760, %v324_v46  ;;  %v444_v60 = vand.u32 4294901760, %v443_v49  ;;  %v332_v61 = vand.u32 4294901760, %v331_v50  ;;  %v4073_v63 = vand.u32 4294901760, %v150_v57  ;;  %v25_v13 = vld [vmem:[%s6060_s1 + $0x48] sm:$0xff]  ;;  %v34_v38 = vld [vmem:[%s6060_s1 + $0x90] sm:$0xff] }
   0xf   :  { %3261 = vmatprep.subr.mxu1 %v437_v55  ;;  %v6072_v0 = vand.u32 4294901760, %v4065_v58  ;;  %v106_v1 = vmul.f32 %v42_v53, %v42_v53  ;;  %v4077_v2 = vsub.f32 %v201_v26, %v4020_v33  ;;  %v90_v3 = vmul.f32 %v26_v54, %v26_v54  ;;  %v24_v26 = vld [vmem:[%s6060_s1 + $0x40] sm:$0xff]  ;;  %v39_v53 = vld [vmem:[%s6060_s1 + $0xb8] sm:$0xff]  ;;  %v18_v37 = vld [vmem:[%s6060_s1 + $0x10] sm:$0xff]  ;;  %s3940_s13 = smov [#allocation3]  }
  0x10   :  { %3232 = vmatpush3.xpose.msra.mxu0 %v4011_v30  ;;  %3262 = vmatpush3.xpose.msra.mxu1 %v325_v56  ;;  %v451_v4 = vand.u32 4294901760, %v450_v62  ;;  %v4081_v5 = vsub.f32 %v153_v42, %v4043_v47  ;;  %v105_v6 = vmul.f32 %v41_v59, %v41_v59  ;;  %v4084_v7 = vsub.f32 %v198_v48, %v4053_v51  ;;  %s3210_s14 = sshll.u32 %s3940_s13, 4  ;;  %s3211_s14 = int_to_ptr.vmem [resolvable:$true] %s3210_s14 }
  0x11   :  { %3233 = vmatprep.subr.mxu0 %v4020_v33  ;;  %3263 = vmatprep.subr.mxu1 %v444_v60  ;;  %v338_v8 = vsub.f32 %v4065_v58, %v6072_v0  ;;  %v195_v10 = vsel %vm112_vm0, %v106_v1, 0  ;;  %v6071_v11 = vand.u32 4294901760, %v4077_v2  ;;  %v147_v12 = vsel %vm112_vm0, %v90_v3, 0  ;;  %s3915_s15 = scalar_lea.vmem %s3211_s14, 32  ;;  %p3920_p1 = scmp.lt.s32.totalorder %s3211_s14, %s3211_s14 }
  0x12   :  { %v4096_v14 = vand.u32 4294901760, %v195_v10  ;;  %v6068_v15 = vand.u32 4294901760, %v4081_v5  ;;  %v192_v16 = vsel %vm112_vm0, %v105_v6, 0  ;;  %v4106_v24 = vand.u32 4294901760, %v147_v12  ;;  %v38_v6 = vld [vmem:[%s6060_s1 + $0xb0] sm:$0xff]  ;;  %p3916_p0 = scmp.ne.s32.totalorder %s3211_s14, %s3915_s15  ;;  %p3921_p2 = scmp.lt.s32.totalorder %s3915_s15, %s3915_s15 }
  0x13   :  { %v339_v21 = vand.u32 4294901760, %v338_v8  ;;  %v457_v22 = vsub.f32 %v4077_v2, %v6071_v11  ;;  %v6067_v25 = vand.u32 4294901760, %v4084_v7  ;;  %v4116_v32 = vand.u32 4294901760, %v192_v16 }
  0x14   :  { %3234 = vmatpush3.xpose.msra.mxu0 %v4043_v47  ;;  %3264 = vmatpush3.xpose.msra.mxu1 %v332_v61  ;;  %v345_v27 = vsub.f32 %v4081_v5, %v6068_v15  ;;  %v89_v35 = vmul.f32 %v25_v13, %v25_v13  ;;  %v4119_v39 = vsub.f32 %v150_v57, %v4073_v63  ;;  %v3938_v54 = vmov 0   ;;  %v23_v61 = vld [vmem:[%s6060_s1 + $0x38] sm:$0xff]  ;;  %p3922_p3 = por %p3921_p2, %p3920_p1 }
  0x15   :  { %3235 = vmatprep.subr.mxu0 %v4053_v51  ;;  %3265 = vmatprep.subr.mxu1 %v451_v4  ;;  %v458_v42 = vand.u32 4294901760, %v457_v22  ;;  %v464_v44 = vsub.f32 %v4084_v7, %v6067_v25  ;;  %v104_v45 = vmul.f32 %v40_v17, %v40_v17  ;;  %v4126_v46 = vsub.f32 %v195_v10, %v4096_v14 }
  0x16   :  { %v144_v48 = vsel %vm112_vm0, %v89_v35, 0  ;;  %v6066_v49 = vand.u32 4294901760, %v4119_v39  ;;  %v88_v50 = vmul.f32 %v24_v26, %v24_v26  ;;  %v4134_v55 = vsel %vm112_vm0, 1.0, %v3938_v54  ;;  %v37_v54 = vld [vmem:[%s6060_s1 + $0xa8] sm:$0xff]  ;;  %p3923_p4 = pnand %p3922_p3, %p3916_p0 }
  0x17   :  { %v346_v56 = vand.u32 4294901760, %v345_v27  ;;  %v4136_v57 = vand.u32 4294901760, %v144_v48  ;;  %v189_v59 = vsel %vm112_vm0, %v104_v45, 0  ;;  %v6064_v60 = vand.u32 4294901760, %v4126_v46  ;;  %v22_v45 = vld [vmem:[%s6060_s1 + $0x30] sm:$0xff] }
  0x18   :  { %3236 = vmatpush3.xpose.msra.mxu0 %v4073_v63  ;;  %3266 = vmatpush3.xpose.msra.mxu1 %v339_v21  ;;  %v465_v62 = vand.u32 4294901760, %v464_v44  ;;  %v352_v1 = vsub.f32 %v4119_v39, %v6066_v49  ;;  %v141_v3 = vsel %vm112_vm0, %v88_v50, 0  ;;  %v4149_v4 = vsub.f32 %v147_v12, %v4106_v24 }
  0x19   :  { %3237 = vmatprep.subr.mxu0 %v4096_v14  ;;  %3267 = vmatprep.subr.mxu1 %v458_v42  ;;  %v4155_v8 = vand.u32 4294901760, %v189_v59  ;;  %v471_v10 = vsub.f32 %v4126_v46, %v6064_v60  ;;  %v103_v13 = vmul.f32 %v39_v53, %v39_v53  ;;  %v4161_v17 = vsub.f32 %v192_v16, %v4116_v32 }
  0x1a   :  { %v4163_v21 = vand.u32 4294901760, %v141_v3  ;;  %v6063_v12 = vand.u32 4294901760, %v4149_v4  ;;  %v87_v22 = vmul.f32 %v23_v61, %v23_v61  ;;  %v4167_v26 = vsub.f32 %v144_v48, %v4136_v57 }
  0x1b   :  { %6270 = vst [vmem:[#allocation6_spill] sm:$0xff] %v4155_v8  ;;  %v353_v27 = vand.u32 4294901760, %v352_v1  ;;  %v186_v35 = vsel %vm112_vm0, %v103_v13, 0  ;;  %v6065_v42 = vand.u32 4294901760, %v4161_v17  ;;  %v102_v44 = vmul.f32 %v38_v6, %v38_v6  ;;  %v21_v13 = vld [vmem:[%s6060_s1 + $0x28] sm:$0xff] }
  0x1c   :  { %6271 = vst [vmem:[#allocation7_spill] sm:$0xff] %v4163_v21  ;;  %3238 = vmatpush3.xpose.msra.mxu0 %v4106_v24  ;;  %3268 = vmatpush3.xpose.msra.mxu1 %v346_v56  ;;  %v359_v16 = vsub.f32 %v4149_v4, %v6063_v12  ;;  %v4178_v50 = vand.u32 4294901760, %v186_v35  ;;  %v138_v48 = vsel %vm112_vm0, %v87_v22, 0  ;;  %v6069_v53 = vand.u32 4294901760, %v4167_v26 }
  0x1d   :  { %3239 = vmatprep.subr.mxu0 %v4116_v32  ;;  %3269 = vmatprep.subr.mxu1 %v465_v62  ;;  %v472_v61 = vand.u32 4294901760, %v471_v10  ;;  %v478_v56 = vsub.f32 %v4161_v17, %v6065_v42  ;;  %v183_v1 = vsel %vm112_vm0, %v102_v44, 0  ;;  %v4191_v6 = vsub.f32 %v189_v59, %v4155_v8 }
  0x1e   :  { %6272 = vst [vmem:[#allocation8_spill] sm:$0xff] %v4178_v50  ;;  %v360_v22 = vand.u32 4294901760, %v359_v16  ;;  %v4196_v12 = vand.u32 4294901760, %v138_v48  ;;  %v366_v62 = vsub.f32 %v4167_v26, %v6069_v53  ;;  %v86_v10 = vmul.f32 %v22_v45, %v22_v45  ;;  %v36_v45 = vld [vmem:[%s6060_s1 + $0xa0] sm:$0xff] }
  0x1f   :  { %v4201_v60 = vand.u32 4294901760, %v183_v1  ;;  %v6070_v42 = vand.u32 4294901760, %v4191_v6  ;;  %v4205_v44 = vsub.f32 %v141_v3, %v4163_v21  ;;  %v101_v59 = vmul.f32 %v37_v54, %v37_v54 }
  0x20   :  { %6273 = vst [vmem:[#allocation9_spill] sm:$0xff] %v4196_v12  ;;  %3240 = vmatpush3.xpose.msra.mxu0 %v4136_v57  ;;  %3270 = vmatpush3.xpose.msra.mxu1 %v353_v27  ;;  %v479_v49 = vand.u32 4294901760, %v478_v56  ;;  %v135_v16 = vsel %vm112_vm0, %v86_v10, 0  ;;  %v4210_v25 = vsub.f32 %v186_v35, %v4178_v50  ;;  %v85_v15 = vmul.f32 %v21_v13, %v21_v13  ;;  %v20_v35 = vld [vmem:[%s6060_s1 + $0x20] sm:$0xff] }
  0x21   :  { %6274 = vst [vmem:[#allocation10_spill] sm:$0xff] %v4201_v60  ;;  %3241 = vmatprep.subr.mxu0 %v4155_v8  ;;  %3271 = vmatprep.subr.mxu1 %v472_v61  ;;  %v485_v3 = vsub.f32 %v4191_v6, %v6070_v42  ;;  %v4219_v54 = vand.u32 4294901760, %v135_v16  ;;  %v6074_v27 = vand.u32 4294901760, %v4205_v44  ;;  %v180_v56 = vsel %vm112_vm0, %v101_v59, 0  ;;  %v35_v42 = vld [vmem:[%s6060_s1 + $0x98] sm:$0xff] }
  0x22   :  { %v367_v13 = vand.u32 4294901760, %v366_v62  ;;  %v6076_v10 = vand.u32 4294901760, %v4210_v25  ;;  %v132_v53 = vsel %vm112_vm0, %v85_v15, 0  ;;  %v4229_v61 = vsub.f32 %v138_v48, %v4196_v12 }
  0x23   :  { %6275 = vst [vmem:[#allocation11_spill] sm:$0xff] %v4219_v54  ;;  %v486_v11 = vand.u32 4294901760, %v485_v3  ;;  %v373_v59 = vsub.f32 %v4205_v44, %v6074_v27  ;;  %v4237_v0 = vand.u32 4294901760, %v180_v56  ;;  %v100_v52 = vmul.f32 %v36_v45, %v36_v45 }
  0x24   :  { %3242 = vmatpush3.xpose.msra.mxu0 %v4163_v21  ;;  %3272 = vmatpush3.xpose.msra.mxu1 %v360_v22  ;;  %v492_v15 = vsub.f32 %v4210_v25, %v6076_v10  ;;  %v6078_v48 = vand.u32 4294901760, %v4229_v61  ;;  %v4245_v62 = vsub.f32 %v183_v1, %v4201_v60  ;;  %v84_v3 = vmul.f32 %v20_v35, %v20_v35 }
  0x25   :  { %6276 = vst [vmem:[#allocation12_spill] sm:$0xff] %v4237_v0  ;;  %3243 = vmatprep.subr.mxu0 %v4178_v50  ;;  %3273 = vmatprep.subr.mxu1 %v479_v49  ;;  %v4248_v27 = vand.u32 4294901760, %v132_v53  ;;  %v177_v45 = vsel %vm112_vm0, %v100_v52, 0  ;;  %v4252_v43 = vsub.f32 %v135_v16, %v4219_v54  ;;  %v99_v22 = vmul.f32 %v35_v42, %v35_v42  ;;  %v19_v49 = vld [vmem:[%s6060_s1 + $0x18] sm:$0xff] }
  0x26   :  { %6277 = vst [vmem:[#allocation13_spill] sm:$0xff] %v4245_v62  ;;  %v380_v10 = vsub.f32 %v4229_v61, %v6078_v48  ;;  %v4257_v41 = vand.u32 4294901760, %v177_v45  ;;  %v6087_v1 = vand.u32 4294901760, %v4245_v62  ;;  %v4265_v35 = vsub.f32 %v4134_v55, %v4134_v55 }
  0x27   :  { %6278 = vst [vmem:[#allocation14_spill] sm:$0xff] %v4248_v27  ;;  %6279 = vst [vmem:[#allocation15_spill] sm:$0xff] %v4252_v43  ;;  %v129_v52 = vsel %vm112_vm0, %v84_v3, 0  ;;  %v6094_v42 = vand.u32 4294901760, %v4252_v43  ;;  %v174_v16 = vsel %vm112_vm0, %v99_v22, 0  ;;  %v4271_v48 = vsub.f32 %v180_v56, %v4237_v0 }
  0x28   :  { %6280 = vst [vmem:[#allocation16_spill] sm:$0xff] %v4257_v41  ;;  %3244 = vmatpush3.xpose.msra.mxu0 %v4196_v12  ;;  %3274 = vmatpush3.xpose.msra.mxu1 %v367_v13  ;;  %v374_v55 = vand.u32 4294901760, %v373_v59  ;;  %v493_v3 = vand.u32 4294901760, %v492_v15  ;;  %v499_v22 = vsub.f32 %v4245_v62, %v6087_v1  ;;  %v4283_v9 = vand.u32 4294901760, %v129_v52 }
  0x29   :  { %6281 = vst [vmem:[#allocation17_spill] sm:$0xff] %v4271_v48  ;;  %3245 = vmatprep.subr.mxu0 %v4201_v60  ;;  %3275 = vmatprep.subr.mxu1 %v486_v11  ;;  %v387_v56 = vsub.f32 %v4252_v43, %v6094_v42  ;;  %v6103_v50 = vand.u32 4294901760, %v4271_v48  ;;  %v83_v21 = vmul.f32 %v19_v49, %v19_v49  ;;  %v4293_v59 = vand.u32 4294901760, %v174_v16  ;;  %v33_v42 = vld [vmem:[%s6060_s1 + $0x88] sm:$0xff] }
  0x2a   :  { %6282 = vst [vmem:[#allocation18_spill] sm:$0xff] %v4283_v9  ;;  %v4291_v13 = vsub.f32 %v132_v53, %v4248_v27  ;;  %v98_v15 = vmul.f32 %v34_v38, %v34_v38  ;;  %v4296_v1 = vsub.f32 %v177_v45, %v4257_v41  ;;  %v82_v12 = vmul.f32 %v18_v37, %v18_v37  ;;  %v32_v45 = vld [vmem:[%s6060_s1 + $0x80] sm:$0xff] }
  0x2b   :  { %6284 = vst [vmem:[#allocation20_spill] sm:$0xff] %v4293_v59  ;;  %v381_v8 = vand.u32 4294901760, %v380_v10  ;;  %v126_v11 = vsel %vm112_vm0, %v83_v21, 0  ;;  %v4304_v49 = vand.u32 4294901760, %v4265_v35  ;;  %v500_v38 = vand.u32 4294901760, %v499_v22  ;;  %v17_v21 = vld [vmem:[%s6060_s1 + $0x8] sm:$0xff] }
  0x2c   :  { %6283 = vst [vmem:[#allocation19_spill] sm:$0xff] %v4291_v13  ;;  %6285 = vst [vmem:[#allocation21_spill] sm:$0xff] %v4296_v1  ;;  %3246 = vmatpush3.xpose.msra.mxu0 %v4219_v54  ;;  %3276 = vmatpush3.xpose.msra.mxu1 %v374_v55  ;;  %v4307_v53 = vand.u32 4294901760, %v126_v11  ;;  %v171_v37 = vsel %vm112_vm0, %v98_v15, 0  ;;  %v388_v60 = vand.u32 4294901760, %v387_v56  ;;  %v506_v55 = vsub.f32 %v4271_v48, %v6103_v50 }
  0x2d   :  { %3247 = vmatprep.subr.mxu0 %v4237_v0  ;;  %3277 = vmatprep.subr.mxu1 %v493_v3  ;;  %v6286_v22 = vand.u32 4294901760, %v4291_v13  ;;  %v123_v10 = vsel %vm112_vm0, %v82_v12, 0  ;;  %v6287_v54 = vand.u32 4294901760, %v4296_v1  ;;  %v4329_v62 = vsub.f32 %v129_v52, %v4283_v9 }
  0x2e   :  { %v97_v0 = vmul.f32 %v33_v42, %v33_v42  ;;  %v4332_v3 = vsub.f32 %v174_v16, %v4293_v59  ;;  %v4334_v56 = vand.u32 4294901760, %v171_v37  ;;  %v81_v50 = vmul.f32 %v17_v21, %v17_v21  ;;  %v16_v16 = vld [vmem:[%s6060_s1] sm:$0xff] }
  0x2f   :  { %v394_v15 = vsub.f32 %v4291_v13, %v6286_v22  ;;  %v513_v43 = vsub.f32 %v4296_v1, %v6287_v54  ;;  %6288 = vst [vmem:[#allocation22_spill] sm:$0xff] %v4329_v62  ;;  %v4337_v48 = vsub.f32 %v126_v11, %v4307_v53  ;;  %v96_v22 = vmul.f32 %v32_v45, %v32_v45 }
  0x30   :  { %6289 = vst [vmem:[#allocation23_spill] sm:$0xff] %v4334_v56  ;;  %3248 = vmatpush3.xpose.msra.mxu0 %v4248_v27  ;;  %3278 = vmatpush3.xpose.msra.mxu1 %v381_v8  ;;  %v4340_v12 = vand.u32 4294901760, %v123_v10  ;;  %v168_v52 = vsel %vm112_vm0, %v97_v0, 0  ;;  %v507_v11 = vand.u32 4294901760, %v506_v55  ;;  %v120_v8 = vsel %vm112_vm0, %v81_v50, 0 }
  0x31   :  { %3249 = vmatprep.subr.mxu0 %v4257_v41  ;;  %3279 = vmatprep.subr.mxu1 %v500_v38  ;;  %v4349_v21 = vand.u32 4294901760, %v168_v52  ;;  %v395_v45 = vand.u32 4294901760, %v394_v15  ;;  %v514_v27 = vand.u32 4294901760, %v513_v43  ;;  %v165_v54 = vsel %vm112_vm0, %v96_v22, 0 }
  0x32   :  { %v6290_v0 = vand.u32 4294901760, %v4329_v62  ;;  %v6116_v1 = vand.u32 4294901760, %v4337_v48  ;;  %v4358_v13 = vsub.f32 %v171_v37, %v4334_v56  ;;  %v80_v41 = vmul.f32 %v16_v16, %v16_v16 }
  0x33   :  { %v6291_v38 = vand.u32 4294901760, %v4332_v3  ;;  %v4364_v43 = vand.u32 4294901760, %v120_v8  ;;  %v4367_v55 = vsub.f32 %v123_v10, %v4340_v12  ;;  %v312_v15 = vsub.f32 %v4265_v35, %v4304_v49 }
  0x34   :  { %v401_v42 = vsub.f32 %v4329_v62, %v6290_v0  ;;  %3250 = vmatpush3.xpose.msra.mxu0 %v4283_v9  ;;  %3280 = vmatpush3.xpose.msra.mxu1 %v388_v60  ;;  %v4372_v37 = vand.u32 4294901760, %v165_v54  ;;  %v117_v60 = vsel %vm112_vm0, %v80_v41, 0  ;;  %v4377_v16 = vsub.f32 %v168_v52, %v4349_v21 }
  0x35   :  { %v520_v50 = vsub.f32 %v4332_v3, %v6291_v38  ;;  %3251 = vmatprep.subr.mxu0 %v4293_v59  ;;  %3281 = vmatprep.subr.mxu1 %v507_v11  ;;  %v4379_v0 = vand.u32 4294901760, %v312_v15  ;;  %v408_v10 = vsub.f32 %v4337_v48, %v6116_v1  ;;  %v4385_v11 = vand.u32 4294901760, %v117_v60 }
  0x36   :  { %v402_v38 = vand.u32 4294901760, %v401_v42  ;;  %v6117_v59 = vand.u32 4294901760, %v4367_v55  ;;  %v4389_v22 = vsub.f32 %v120_v8, %v4364_v43  ;;  %v6294_v52 = vand.u32 4294901760, %v4358_v13 }
  0x37   :  { %6292 = vst [vmem:[#allocation24_spill] sm:$0xff] %v4379_v0  ;;  %v521_v41 = vand.u32 4294901760, %v520_v50  ;;  %v6118_v1 = vand.u32 4294901760, %v4377_v16  ;;  %3259 = vmatprep.mubr.f32.mxu0 %v4379_v0  ;;  %v409_v42 = vand.u32 4294901760, %v408_v10  ;;  %v4406_v50 = vsub.f32 %v117_v60, %v4385_v11 }
  0x38   :  { %3252 = vmatpush3.xpose.msra.mxu0 %v4307_v53  ;;  %3282 = vmatpush3.xpose.msra.mxu1 %v395_v45  ;;  %6293 = vst [vmem:[#allocation25_spill] sm:$0xff] %v4389_v22  ;;  %v527_v15 = vsub.f32 %v4358_v13, %v6294_v52  ;;  %v4397_v45 = vsub.f32 %v165_v54, %v4372_v37  ;;  %v6121_v8 = vand.u32 4294901760, %v4389_v22 }
  0x39   :  { %3253 = vmatprep.subr.mxu0 %v4334_v56  ;;  %3283 = vmatprep.subr.mxu1 %v514_v27  ;;  %v415_v27 = vsub.f32 %v4367_v55, %v6117_v59  ;;  %v534_v52 = vsub.f32 %v4377_v16, %v6118_v1  ;;  %v6119_v60 = vand.u32 4294901760, %v4406_v50 }
  0x3a   :  { %v528_v54 = vand.u32 4294901760, %v527_v15  ;;  %v422_v59 = vsub.f32 %v4389_v22, %v6121_v8  ;;  %v6306_v8 = vld [vmem:[#allocation11_spill] sm:$0xff] }
  0x3b   :  { %v416_v10 = vand.u32 4294901760, %v415_v27 }
  0x3c   :  { %3254 = vmatpush3.xpose.msra.mxu0 %v4340_v12  ;;  %3284 = vmatpush3.xpose.msra.mxu1 %v402_v38  ;;  %v6120_v38 = vand.u32 4294901760, %v4397_v45  ;;  %v423_v1 = vand.u32 4294901760, %v422_v59  ;;  %v6295_v59 = vmov 1.0  }
  0x3d   :  { %3255 = vmatprep.subr.mxu0 %v4349_v21  ;;  %3285 = vmatprep.subr.mxu1 %v521_v41  ;;  %v535_v41 = vand.u32 4294901760, %v534_v52  ;;  %v6297_v52 = vld [vmem:[#allocation6_spill] sm:$0xff] }
  0x3e   :  { %v541_v15 = vsub.f32 %v4397_v45, %v6120_v38  ;;  %v6305_v38 = vld [vmem:[#allocation10_spill] sm:$0xff] }
  0x40   :  { %3256 = vmatpush3.xpose.msra.mxu0 %v4364_v43  ;;  %3286 = vmatpush3.xpose.msra.mxu1 %v409_v42  ;;  %v429_v42 = vsub.f32 %v4406_v50, %v6119_v60  ;;  %v542_v27 = vand.u32 4294901760, %v541_v15  ;;  %v6300_v15 = vld [vmem:[#allocation17_spill] sm:$0xff] }
  0x41   :  { %3257 = vmatprep.subr.mxu0 %v4372_v37  ;;  %3287 = vmatprep.subr.mxu1 %v528_v54  ;;  %v6304_v60 = vld [vmem:[#allocation21_spill] sm:$0xff] }
  0x42   :  { %v430_v54 = vand.u32 4294901760, %v429_v42  ;;  %v6301_v42 = vld [vmem:[#allocation8_spill] sm:$0xff] }
  0x44   :  { %3258 = vmatpush3.xpose.msra.mxu0 %v4385_v11  ;;  %3288 = vmatpush3.xpose.msra.mxu1 %v416_v10  ;;  %v6298_v10 = vld [vmem:[#allocation15_spill] sm:$0xff] }
  0x45   :  { %3289 = vmatprep.subr.mxu1 %v535_v41  ;;  %3295 = vmatprep.subr.mxu0 %v4009_v29  ;;  %v6299_v41 = vld [vmem:[#allocation7_spill] sm:$0xff] }
  0x47   :  { %3260 = vmatmul.mubr.f32.vlgmr.msra.gmra.mxu0 %v4379_v0  ;;  %v6307_v0 = vld [vmem:[#allocation12_spill] sm:$0xff] }
  0x48   :  { %3290 = vmatpush3.xpose.msra.mxu1 %v423_v1  ;;  %3296 = vmatpush3.xpose.msra.mxu0 %v4014_v31  ;;  %v6296_v1 = vld [vmem:[#allocation13_spill] sm:$0xff] }
  0x49   :  { %3291 = vmatprep.subr.mxu1 %v542_v27  ;;  %3297 = vmatprep.subr.mxu0 %v4023_v34  ;;  %v6302_v27 = vld [vmem:[#allocation19_spill] sm:$0xff] }
  0x4a   :  { %3327 = vmatprep.mubr.f32.mxu0 %v4265_v35 }
  0x4c   :  { %3292 = vmatpush3.xpose.msra.mxu1 %v430_v54  ;;  %3298 = vmatpush3.xpose.msra.mxu0 %v4026_v36  ;;  %v6303_v54 = vld [vmem:[#allocation9_spill] sm:$0xff] }
  0x4d   :  { %3299 = vmatprep.subr.mxu0 %v4032_v40  ;;  %3329 = vmatprep.subr.mxu1 %v3987_v18 }
  0x4f   :  { %3294 = vmatmul.mubr.msk.f32.vlgmr.msra.gmra.mxu1 %vm112_vm0, %v6295_v59 }
  0x50   :  { %3300 = vmatpush3.xpose.msra.mxu0 %v4065_v58  ;;  %3330 = vmatpush3.xpose.msra.mxu1 %v3989_v19 }
  0x51   :  { %3301 = vmatprep.subr.mxu0 %v4077_v2  ;;  %3331 = vmatprep.subr.mxu1 %v3991_v20 }
  0x52   :  { %3361 = vmatprep.mubr.f32.mxu1 %v4304_v49 }
  0x54   :  { %3302 = vmatpush3.xpose.msra.mxu0 %v4081_v5  ;;  %3332 = vmatpush3.xpose.msra.mxu1 %v3997_v23 }
  0x55   :  { %3303 = vmatprep.subr.mxu0 %v4084_v7  ;;  %3333 = vmatprep.subr.mxu1 %v4006_v28 }
  0x58   :  { %3304 = vmatpush3.xpose.msra.mxu0 %v4119_v39  ;;  %3334 = vmatpush3.xpose.msra.mxu1 %v4011_v30 }
  0x59   :  { %3305 = vmatprep.subr.mxu0 %v4126_v46  ;;  %3335 = vmatprep.subr.mxu1 %v4020_v33 }
  0x5c   :  { %3306 = vmatpush3.xpose.msra.mxu0 %v4149_v4  ;;  %3336 = vmatpush3.xpose.msra.mxu1 %v4043_v47 }
  0x5d   :  { %3307 = vmatprep.subr.mxu0 %v4161_v17  ;;  %3337 = vmatprep.subr.mxu1 %v4053_v51 }
  0x60   :  { %3308 = vmatpush3.xpose.msra.mxu0 %v4167_v26  ;;  %3338 = vmatpush3.xpose.msra.mxu1 %v4073_v63 }
  0x61   :  { %3309 = vmatprep.subr.mxu0 %v4191_v6  ;;  %3339 = vmatprep.subr.mxu1 %v4096_v14 }
  0x64   :  { %3310 = vmatpush3.xpose.msra.mxu0 %v4205_v44  ;;  %3340 = vmatpush3.xpose.msra.mxu1 %v4106_v24 }
  0x65   :  { %3311 = vmatprep.subr.mxu0 %v4210_v25  ;;  %3341 = vmatprep.subr.mxu1 %v4116_v32 }
  0x68   :  { %3312 = vmatpush3.xpose.msra.mxu0 %v4229_v61  ;;  %3342 = vmatpush3.xpose.msra.mxu1 %v4136_v57 }
  0x69   :  { %3313 = vmatprep.subr.mxu0 %v6296_v1  ;;  %3343 = vmatprep.subr.mxu1 %v6297_v52 }
  0x6c   :  { %3314 = vmatpush3.xpose.msra.mxu0 %v6298_v10  ;;  %3344 = vmatpush3.xpose.msra.mxu1 %v6299_v41 }
  0x6d   :  { %3315 = vmatprep.subr.mxu0 %v6300_v15  ;;  %3345 = vmatprep.subr.mxu1 %v6301_v42  ;;  %v6308_v15 = vld [vmem:[#allocation14_spill] sm:$0xff] }
  0x70   :  { %3316 = vmatpush3.xpose.msra.mxu0 %v6302_v27  ;;  %3346 = vmatpush3.xpose.msra.mxu1 %v6303_v54  ;;  %v6309_v27 = vld [vmem:[#allocation16_spill] sm:$0xff] }
  0x71   :  { %3317 = vmatprep.subr.mxu0 %v6304_v60  ;;  %3347 = vmatprep.subr.mxu1 %v6305_v38 }
  0x74   :  { %3318 = vmatpush3.xpose.msra.mxu0 %v4329_v62  ;;  %3348 = vmatpush3.xpose.msra.mxu1 %v6306_v8  ;;  %v6310_v62 = vld [vmem:[#allocation20_spill] sm:$0xff] }
  0x75   :  { %3319 = vmatprep.subr.mxu0 %v4332_v3  ;;  %3349 = vmatprep.subr.mxu1 %v6307_v0 }
  0x78   :  { %3320 = vmatpush3.xpose.msra.mxu0 %v4337_v48  ;;  %3350 = vmatpush3.xpose.msra.mxu1 %v6308_v15 }
  0x79   :  { %3321 = vmatprep.subr.mxu0 %v4358_v13  ;;  %3351 = vmatprep.subr.mxu1 %v6309_v27 }
  0x7c   :  { %3322 = vmatpush3.xpose.msra.mxu0 %v4367_v55  ;;  %3352 = vmatpush3.xpose.msra.mxu1 %v4283_v9  ;;  %v6311_v9 = vand.u32 4294901760, %v4009_v29  ;;  %v6314_v29 = vand.u32 4294901760, %v4026_v36  ;;  %v6318_v36 = vand.u32 4294901760, %v4081_v5 }
  0x7d   :  { %3323 = vmatprep.subr.mxu0 %v4377_v16  ;;  %3353 = vmatprep.subr.mxu1 %v6310_v62 }
  0x80   :  { %3324 = vmatpush3.xpose.msra.mxu0 %v4389_v22  ;;  %3354 = vmatpush3.xpose.msra.mxu1 %v4307_v53  ;;  %v6312_v22 = vand.u32 4294901760, %v4014_v31  ;;  %v6316_v31 = vand.u32 4294901760, %v4065_v58  ;;  %v6329_v58 = vand.u32 4294901760, %v6296_v1  ;;  %v4619_v1 = vld [vmem:[%s6061_s2 + $0x68] sm:$0xff] }
  0x81   :  { %3325 = vmatprep.subr.mxu0 %v4397_v45  ;;  %3355 = vmatprep.subr.mxu1 %v4334_v56  ;;  %v6313_v56 = vand.u32 4294901760, %v4023_v34  ;;  %v6317_v34 = vand.u32 4294901760, %v4077_v2  ;;  %v6331_v2 = vld [vmem:[#allocation17_spill] sm:$0xff]  ;;  %6346 = vst [vmem:[#allocation9_spill] sm:$0xff] %v4619_v1 }
  0x82   :  { %v6332_v5 = vand.u32 4294901760, %v6331_v2 }
  0x84   :  { %3326 = vmatpush3.xpose.msra.mxu0 %v4406_v50  ;;  %3356 = vmatpush3.xpose.msra.mxu1 %v4340_v12 }
  0x85   :  { %3357 = vmatprep.subr.mxu1 %v4349_v21  ;;  %3363 = vmatprep.subr.mxu0 %v6311_v9  ;;  %v6315_v9 = vand.u32 4294901760, %v4032_v40  ;;  %v6322_v40 = vand.u32 4294901760, %v4149_v4 }
  0x87   :  { %3328 = vmatmul.mubr.f32.vlgmr.msra.gmra.mxu0 %v4265_v35 }
  0x88   :  { %3358 = vmatpush3.xpose.msra.mxu1 %v4364_v43  ;;  %3364 = vmatpush3.xpose.msra.mxu0 %v6312_v22  ;;  %v4604_v22 = vld [vmem:[%s6061_s2 + $0xe8] sm:$0xff] }
  0x89   :  { %3359 = vmatprep.subr.mxu1 %v4372_v37  ;;  %3365 = vmatprep.subr.mxu0 %v6313_v56  ;;  %6343 = vst [vmem:[#allocation8_spill] sm:$0xff] %v4604_v22 }
  0x8a   :  { %3395 = vmatprep.mubr.msk.f32.mxu0 %vm112_vm0, %v6295_v59 }
  0x8c   :  { %3360 = vmatpush3.xpose.msra.mxu1 %v4385_v11  ;;  %3366 = vmatpush3.xpose.msra.mxu0 %v6314_v29  ;;  %v6350_v29 = vand.u32 4294901760, %v4377_v16  ;;  %v4660_v16 = vld [vmem:[%s6061_s2 + $0xd8] sm:$0xff] }
  0x8d   :  { %3367 = vmatprep.subr.mxu0 %v6315_v9  ;;  %3397 = vmatprep.subr.mxu1 %v3987_v18  ;;  %v6319_v18 = vand.u32 4294901760, %v4084_v7  ;;  %v4563_v7 = vld [vmem:[%s6061_s2 + $0xf8] sm:$0xff]  ;;  %6352 = vst [vmem:[#allocation11_spill] sm:$0xff] %v4660_v16 }
  0x8e   :  { %6333 = vst [vmem:[#allocation13_spill] sm:$0xff] %v4563_v7 }
  0x8f   :  { %3362 = vmatmul.mubr.f32.vlgmr.msra.gmra.mxu1 %v4304_v49 }
  0x90   :  { %3368 = vmatpush3.xpose.msra.mxu0 %v6316_v31  ;;  %3398 = vmatpush3.xpose.msra.mxu1 %v3989_v19  ;;  %v6320_v19 = vand.u32 4294901760, %v4119_v39  ;;  %v4576_v39 = vld [vmem:[%s6061_s2 + $0x78] sm:$0xff] }
  0x91   :  { %3369 = vmatprep.subr.mxu0 %v6317_v34  ;;  %3399 = vmatprep.subr.mxu1 %v3991_v20  ;;  %v6321_v20 = vand.u32 4294901760, %v4126_v46  ;;  %6337 = vst [vmem:[#allocation6_spill] sm:$0xff] %v4576_v39  ;;  %v4581_v46 = vld [vmem:[%s6061_s2 + $0xf0] sm:$0xff]  ;;  %v4652_v34 = vld [vmem:[%s6061_s2 + $0x60] sm:$0xff] }
  0x92   :  { %3429 = vmatprep.mubr.msk.f32.mxu1 %vm112_vm0, %v6295_v59  ;;  %6338 = vst [vmem:[#allocation15_spill] sm:$0xff] %v4581_v46  ;;  %6351 = vst [vmem:[#allocation10_spill] sm:$0xff] %v4652_v34 }
  0x94   :  { %3370 = vmatpush3.xpose.msra.mxu0 %v6318_v36  ;;  %3400 = vmatpush3.xpose.msra.mxu1 %v3997_v23  ;;  %v6323_v23 = vand.u32 4294901760, %v4161_v17  ;;  %v1082_v17 = vmul.f32 %v4576_v39, %v4576_v39 }
  0x95   :  { %3371 = vmatprep.subr.mxu0 %v6319_v18  ;;  %3401 = vmatprep.subr.mxu1 %v4006_v28  ;;  %v6324_v28 = vand.u32 4294901760, %v4167_v26  ;;  %v4591_v26 = vld [vmem:[%s6061_s2 + $0x70] sm:$0xff] }
  0x96   :  { %6341 = vst [vmem:[#allocation7_spill] sm:$0xff] %v4591_v26  ;;  %v1081_v56 = vmul.f32 %v4591_v26, %v4591_v26 }
  0x98   :  { %3372 = vmatpush3.xpose.msra.mxu0 %v6320_v19  ;;  %3402 = vmatpush3.xpose.msra.mxu1 %v4011_v30  ;;  %v6325_v30 = vand.u32 4294901760, %v4191_v6  ;;  %v6342_v6 = vand.u32 4294901760, %v4332_v3 }
  0x99   :  { %3373 = vmatprep.subr.mxu0 %v6321_v20  ;;  %3403 = vmatprep.subr.mxu1 %v4020_v33  ;;  %v6326_v33 = vand.u32 4294901760, %v4205_v44 }
  0x9c   :  { %3374 = vmatpush3.xpose.msra.mxu0 %v6322_v40  ;;  %3404 = vmatpush3.xpose.msra.mxu1 %v4043_v47  ;;  %v6327_v47 = vand.u32 4294901760, %v4210_v25  ;;  %v6336_v25 = vand.u32 4294901760, %v6304_v60 }
  0x9d   :  { %3375 = vmatprep.subr.mxu0 %v6323_v23  ;;  %3405 = vmatprep.subr.mxu1 %v4053_v51  ;;  %v6328_v51 = vand.u32 4294901760, %v4229_v61  ;;  %v1097_v61 = vmul.f32 %v4581_v46, %v4581_v46  ;;  %v6355_v23 = vand.u32 4294901760, %v4397_v45  ;;  %v1094_v45 = vmul.f32 %v4660_v16, %v4660_v16 }
  0x9f   :  { %v1190_v60 = vsel %vm112_vm0, %v1097_v61, 0 }
  0xa0   :  { %3376 = vmatpush3.xpose.msra.mxu0 %v6324_v28  ;;  %3406 = vmatpush3.xpose.msra.mxu1 %v4073_v63  ;;  %v6330_v63 = vand.u32 4294901760, %v6298_v10  ;;  %v1142_v10 = vsel %vm112_vm0, %v1081_v56, 0  ;;  %v6356_v28 = vld [vmem:[#allocation23_spill] sm:$0xff] }
  0xa1   :  { %3377 = vmatprep.subr.mxu0 %v6325_v30  ;;  %3407 = vmatprep.subr.mxu1 %v4096_v14  ;;  %v6334_v14 = vld [vmem:[#allocation19_spill] sm:$0xff]  ;;  %v4644_v9 = vand.u32 4294901760, %v1142_v10 }
  0xa2   :  { %v4735_v56 = vld [vmem:[%s6061_s2 + $0xc8] sm:$0xff] }
  0xa3   :  { %6361 = vst [vmem:[#allocation20_spill] sm:$0xff] %v4735_v56 }
  0xa4   :  { %3378 = vmatpush3.xpose.msra.mxu0 %v6326_v33  ;;  %3408 = vmatpush3.xpose.msra.mxu1 %v4106_v24  ;;  %v6335_v24 = vand.u32 4294901760, %v6334_v14  ;;  %v1079_v33 = vmul.f32 %v4652_v34, %v4652_v34 }
  0xa5   :  { %3379 = vmatprep.subr.mxu0 %v6327_v47  ;;  %3409 = vmatprep.subr.mxu1 %v4116_v32  ;;  %v1098_v32 = vmul.f32 %v4563_v7, %v4563_v7  ;;  %v4683_v47 = vsub.f32 %v1142_v10, %v4644_v9 }
  0xa7   :  { %v1193_v44 = vsel %vm112_vm0, %v1098_v32, 0  ;;  %v4708_v32 = vld [vmem:[%s6061_s2 + $0x50] sm:$0xff] }
  0xa8   :  { %3380 = vmatpush3.xpose.msra.mxu0 %v6328_v51  ;;  %3410 = vmatpush3.xpose.msra.mxu1 %v4136_v57  ;;  %v6339_v57 = vld [vmem:[#allocation22_spill] sm:$0xff]  ;;  %v4609_v3 = vand.u32 4294901760, %v1193_v44  ;;  %6360 = vst [vmem:[#allocation16_spill] sm:$0xff] %v4708_v32  ;;  %v1077_v61 = vmul.f32 %v4708_v32, %v4708_v32 }
  0xa9   :  { %3381 = vmatprep.subr.mxu0 %v6329_v58  ;;  %3411 = vmatprep.subr.mxu1 %v6297_v52  ;;  %v6340_v4 = vand.u32 4294901760, %v6339_v57  ;;  %v4691_v58 = vld [vmem:[%s6061_s2 + $0xd0] sm:$0xff] }
  0xaa   :  { %6358 = vst [vmem:[#allocation14_spill] sm:$0xff] %v4691_v58 }
  0xac   :  { %3382 = vmatpush3.xpose.msra.mxu0 %v6330_v63  ;;  %3412 = vmatpush3.xpose.msra.mxu1 %v6299_v41  ;;  %v6348_v41 = vand.u32 4294901760, %v4367_v55 }
  0xad   :  { %3383 = vmatprep.subr.mxu0 %v6332_v5  ;;  %3413 = vmatprep.subr.mxu1 %v6301_v42  ;;  %v4634_v42 = vand.u32 4294901760, %v1190_v60  ;;  %v6359_v5 = vand.u32 4294901760, %v4406_v50 }
  0xaf   :  { %v4668_v40 = vsub.f32 %v1190_v60, %v4634_v42 }
  0xb0   :  { %3384 = vmatpush3.xpose.msra.mxu0 %v6335_v24  ;;  %3414 = vmatpush3.xpose.msra.mxu1 %v6303_v54  ;;  %v1080_v54 = vmul.f32 %v4619_v1, %v4619_v1 }
  0xb1   :  { %3385 = vmatprep.subr.mxu0 %v6336_v25  ;;  %3415 = vmatprep.subr.mxu1 %v6305_v38  ;;  %v6345_v38 = vand.u32 4294901760, %v4358_v13  ;;  %v4629_v13 = vld [vmem:[%s6061_s2 + $0xe0] sm:$0xff]  ;;  %v6131_v24 = vand.u32 4294901760, %v4668_v40 }
  0xb2   :  { %6347 = vst [vmem:[#allocation21_spill] sm:$0xff] %v4629_v13  ;;  %v1095_v31 = vmul.f32 %v4629_v13, %v4629_v13  ;;  %v1139_v20 = vsel %vm112_vm0, %v1080_v54, 0  ;;  %v4762_v54 = vld [vmem:[%s6061_s2 + $0xc0] sm:$0xff] }
  0xb3   :  { %v4693_v63 = vand.u32 4294901760, %v1139_v20  ;;  %6363 = vst [vmem:[#allocation19_spill] sm:$0xff] %v4762_v54 }
  0xb4   :  { %3386 = vmatpush3.xpose.msra.mxu0 %v6340_v4  ;;  %3416 = vmatpush3.xpose.msra.mxu1 %v6306_v8  ;;  %v6344_v8 = vand.u32 4294901760, %v4337_v48  ;;  %v1096_v48 = vmul.f32 %v4604_v22, %v4604_v22  ;;  %v1184_v51 = vsel %vm112_vm0, %v1095_v31, 0  ;;  %v1093_v4 = vmul.f32 %v4691_v58, %v4691_v58 }
  0xb5   :  { %3387 = vmatprep.subr.mxu0 %v6342_v6  ;;  %3417 = vmatprep.subr.mxu1 %v6307_v0  ;;  %v1145_v0 = vsel %vm112_vm0, %v1082_v17, 0  ;;  %v4712_v50 = vand.u32 4294901760, %v1184_v51  ;;  %v6130_v17 = vand.u32 4294901760, %v4683_v47  ;;  %v1181_v6 = vsel %vm112_vm0, %v1094_v45, 0 }
  0xb6   :  { %v4623_v52 = vand.u32 4294901760, %v1145_v0  ;;  %v1187_v55 = vsel %vm112_vm0, %v1096_v48, 0  ;;  %v4748_v48 = vld [vmem:[%s6061_s2 + $0x48] sm:$0xff] }
  0xb7   :  { %v4673_v30 = vand.u32 4294901760, %v1187_v55  ;;  %6362 = vst [vmem:[#allocation17_spill] sm:$0xff] %v4748_v48 }
  0xb8   :  { %3388 = vmatpush3.xpose.msra.mxu0 %v6344_v8  ;;  %3418 = vmatpush3.xpose.msra.mxu1 %v6308_v15  ;;  %v6349_v15 = vld [vmem:[#allocation18_spill] sm:$0xff]  ;;  %v4655_v36 = vsub.f32 %v1145_v0, %v4623_v52  ;;  %v1426_v0 = vsub.f32 %v4668_v40, %v6131_v24 }
  0xb9   :  { %3389 = vmatprep.subr.mxu0 %v6345_v38  ;;  %3419 = vmatprep.subr.mxu1 %v6309_v27  ;;  %v4637_v27 = vsub.f32 %v1193_v44, %v4609_v3  ;;  %v4716_v57 = vsub.f32 %v1187_v55, %v4673_v30  ;;  %v6364_v55 = vld [vmem:[#allocation24_spill] sm:$0xff] }
  0xba   :  { %v6133_v2 = vand.u32 4294901760, %v4655_v36  ;;  %v1427_v45 = vand.u32 4294901760, %v1426_v0  ;;  %v4813_v0 = vld [vmem:[%s6061_s2 + $0xb8] sm:$0xff] }
  0xbb   :  { %v6134_v19 = vand.u32 4294901760, %v4637_v27  ;;  %v6129_v10 = vand.u32 4294901760, %v4716_v57  ;;  %6366 = vst [vmem:[#allocation18_spill] sm:$0xff] %v4813_v0 }
  0xbc   :  { %3390 = vmatpush3.xpose.msra.mxu0 %v6348_v41  ;;  %3420 = vmatpush3.xpose.msra.mxu1 %v6349_v15  ;;  %v1307_v44 = vsub.f32 %v4655_v36, %v6133_v2  ;;  %v1178_v41 = vsel %vm112_vm0, %v1093_v4, 0  ;;  %v4757_v15 = vsub.f32 %v1184_v51, %v4712_v50  ;;  %v1091_v51 = vmul.f32 %v4762_v54, %v4762_v54 }
  0xbd   :  { %3391 = vmatprep.subr.mxu0 %v6350_v29  ;;  %3421 = vmatprep.subr.mxu1 %v6310_v62  ;;  %v6353_v62 = vld [vmem:[#allocation25_spill] sm:$0xff]  ;;  %v1419_v14 = vsub.f32 %v4637_v27, %v6134_v19  ;;  %v1092_v29 = vmul.f32 %v4735_v56, %v4735_v56  ;;  %v4850_v19 = vld [vmem:[%s6061_s2 + $0xb0] sm:$0xff] }
  0xbe   :  { %v6354_v18 = vand.u32 4294901760, %v6353_v62  ;;  %6371 = vst [vmem:[#allocation28_spill] sm:$0xff] %v4850_v19 }
  0xbf   :  { %v1420_v8 = vand.u32 4294901760, %v1419_v14  ;;  %v1175_v4 = vsel %vm112_vm0, %v1092_v29, 0 }
  0xc0   :  { %3392 = vmatpush3.xpose.msra.mxu0 %v6354_v18  ;;  %3422 = vmatpush3.xpose.msra.mxu1 %v4307_v53  ;;  %v4680_v53 = vld [vmem:[%s6061_s2 + $0x58] sm:$0xff]  ;;  %v1130_v18 = vsel %vm112_vm0, %v1077_v61, 0 }
  0xc1   :  { %3393 = vmatprep.subr.mxu0 %v6355_v23  ;;  %3423 = vmatprep.subr.mxu1 %v6356_v28  ;;  %6357 = vst [vmem:[#allocation12_spill] sm:$0xff] %v4680_v53  ;;  %v1078_v25 = vmul.f32 %v4680_v53, %v4680_v53  ;;  %v1308_v23 = vand.u32 4294901760, %v1307_v44 }
  0xc3   :  { %v1133_v60 = vsel %vm112_vm0, %v1078_v25, 0  ;;  %v4796_v25 = vld [vmem:[%s6061_s2 + $0x40] sm:$0xff] }
  0xc4   :  { %3394 = vmatpush3.xpose.msra.mxu0 %v6359_v5  ;;  %3424 = vmatpush3.xpose.msra.mxu1 %v4340_v12  ;;  %v1136_v12 = vsel %vm112_vm0, %v1079_v33, 0  ;;  %v4770_v31 = vand.u32 4294901760, %v1133_v60  ;;  %v4781_v33 = vand.u32 4294901760, %v1178_v41  ;;  %v1433_v5 = vsub.f32 %v4716_v57, %v6129_v10  ;;  %6365 = vst [vmem:[#allocation22_spill] sm:$0xff] %v4796_v25 }
  0xc5   :  { %3425 = vmatprep.subr.mxu1 %v4349_v21  ;;  %3431 = vmatprep.subr.mxu0 %v4609_v3  ;;  %v4725_v21 = vsub.f32 %v1139_v20, %v4693_v63  ;;  %v4742_v38 = vand.u32 4294901760, %v1136_v12  ;;  %v1076_v20 = vmul.f32 %v4748_v48, %v4748_v48 }
  0xc6   :  { %v4804_v61 = vsub.f32 %v1133_v60, %v4770_v31  ;;  %v4819_v60 = vsub.f32 %v1178_v41, %v4781_v33  ;;  %v4833_v41 = vld [vmem:[%s6061_s2 + $0x38] sm:$0xff] }
  0xc7   :  { %3396 = vmatmul.mubr.msk.f32.vlgmr.msra.gmra.mxu0 %vm112_vm0, %v6295_v59  ;;  %v6128_v62 = vand.u32 4294901760, %v4725_v21  ;;  %v4779_v28 = vsub.f32 %v1136_v12, %v4742_v38  ;;  %v4798_v12 = vand.u32 4294901760, %v1130_v18  ;;  %6368 = vst [vmem:[#allocation23_spill] sm:$0xff] %v4833_v41 }
  0xc8   :  { %3426 = vmatpush3.xpose.msra.mxu1 %v4364_v43  ;;  %3432 = vmatpush3.xpose.msra.mxu0 %v4623_v52  ;;  %v4752_v43 = vand.u32 4294901760, %v1181_v6 }
  0xc9   :  { %3427 = vmatprep.subr.mxu1 %v4372_v37  ;;  %3433 = vmatprep.subr.mxu0 %v4634_v42  ;;  %v1314_v37 = vsub.f32 %v4683_v47, %v6130_v17  ;;  %v6138_v29 = vand.u32 4294901760, %v4779_v28  ;;  %v4827_v17 = vand.u32 4294901760, %v1175_v4 }
  0xca   :  { %3463 = vmatprep.mubr.f32.mxu0 %v6364_v55  ;;  %v4791_v14 = vsub.f32 %v1181_v6, %v4752_v43  ;;  %v1321_v6 = vsub.f32 %v4725_v21, %v6128_v62  ;;  %v1075_v62 = vmul.f32 %v4796_v25, %v4796_v25 }
  0xcb   :  { %v1315_v44 = vand.u32 4294901760, %v1314_v37  ;;  %v1172_v37 = vsel %vm112_vm0, %v1091_v51, 0  ;;  %6367 = vst [vmem:[#allocation25_spill] sm:$0xff] %v4827_v17  ;;  %v4836_v51 = vsub.f32 %v1130_v18, %v4798_v12  ;;  %v1328_v18 = vsub.f32 %v4779_v28, %v6138_v29  ;;  %v4870_v29 = vld [vmem:[%s6061_s2 + $0x30] sm:$0xff] }
  0xcc   :  { %3428 = vmatpush3.xpose.msra.mxu1 %v4385_v11  ;;  %3434 = vmatpush3.xpose.msra.mxu0 %v4644_v9  ;;  %v6132_v11 = vand.u32 4294901760, %v4757_v15  ;;  %v4845_v2 = vand.u32 4294901760, %v1172_v37  ;;  %v6372_v25 = vand.u32 4294901760, %v4791_v14  ;;  %6373 = vst [vmem:[#allocation29_spill] sm:$0xff] %v4870_v29  ;;  %v1073_v32 = vmul.f32 %v4870_v29, %v4870_v29 }
  0xcd   :  { %3435 = vmatprep.subr.mxu0 %v4673_v30  ;;  %3465 = vmatprep.subr.mxu1 %v1420_v8  ;;  %v1127_v8 = vsel %vm112_vm0, %v1076_v20, 0  ;;  %v1434_v20 = vand.u32 4294901760, %v1433_v5  ;;  %v1322_v5 = vand.u32 4294901760, %v1321_v6  ;;  %v1124_v6 = vsel %vm112_vm0, %v1075_v62, 0 }
  0xce   :  { %v1440_v10 = vsub.f32 %v4757_v15, %v6132_v11  ;;  %v4838_v24 = vand.u32 4294901760, %v1127_v8  ;;  %6370 = vst [vmem:[#allocation27_spill] sm:$0xff] %v4845_v2  ;;  %v1074_v11 = vmul.f32 %v4833_v41, %v4833_v41  ;;  %v1447_v54 = vsub.f32 %v4791_v14, %v6372_v25  ;;  %v4882_v25 = vld [vmem:[%s6061_s2 + $0xa8] sm:$0xff] }
  0xcf   :  { %3430 = vmatmul.mubr.msk.f32.vlgmr.msra.gmra.mxu1 %vm112_vm0, %v6295_v59  ;;  %6374 = vst [vmem:[#allocation30_spill] sm:$0xff] %v4882_v25  ;;  %v4887_v48 = vand.u32 4294901760, %v1124_v6  ;;  %v1118_v13 = vsel %vm112_vm0, %v1073_v32, 0  ;;  %v4945_v32 = vld [vmem:[%s6061_s2 + $0x20] sm:$0xff] }
  0xd0   :  { %3436 = vmatpush3.xpose.msra.mxu0 %v4693_v63  ;;  %3466 = vmatpush3.xpose.msra.mxu1 %v1308_v23  ;;  %6369 = vst [vmem:[#allocation26_spill] sm:$0xff] %v4838_v24  ;;  %v4873_v62 = vsub.f32 %v1127_v8, %v4838_v24  ;;  %v4890_v8 = vsub.f32 %v1172_v37, %v4845_v2  ;;  %v6377_v23 = vand.u32 4294901760, %v4819_v60  ;;  %v1121_v56 = vsel %vm112_vm0, %v1074_v11, 0  ;;  %v4913_v11 = vld [vmem:[%s6061_s2 + $0xa0] sm:$0xff] }
  0xd1   :  { %3437 = vmatprep.subr.mxu0 %v4712_v50  ;;  %3467 = vmatprep.subr.mxu1 %v1427_v45  ;;  %v1090_v45 = vmul.f32 %v4813_v0, %v4813_v0  ;;  %v1441_v0 = vand.u32 4294901760, %v1440_v10  ;;  %v1089_v10 = vmul.f32 %v4850_v19, %v4850_v19  ;;  %6376 = vst [vmem:[#allocation31_spill] sm:$0xff] %v4887_v48  ;;  %6380 = vst [vmem:[#allocation34_spill] sm:$0xff] %v4913_v11 }
  0xd2   :  { %3497 = vmatprep.mubr.msk.f32.mxu1 %vm112_vm0, %v6295_v59  ;;  %v1454_v19 = vsub.f32 %v4819_v60, %v6377_v23  ;;  %v4908_v23 = vld [vmem:[%s6061_s2 + $0x28] sm:$0xff]  ;;  %v4923_v53 = vand.u32 4294901760, %v1121_v56  ;;  %6385 = vst [vmem:[#allocation37_spill] sm:$0xff] %v4945_v32  ;;  %v4961_v1 = vand.u32 4294901760, %v1118_v13 }
  0xd3   :  { %6379 = vst [vmem:[#allocation33_spill] sm:$0xff] %v4908_v23  ;;  %v1166_v37 = vsel %vm112_vm0, %v1089_v10, 0  ;;  %v1087_v10 = vmul.f32 %v4913_v11, %v4913_v11  ;;  %v6386_v11 = vand.u32 4294901760, %v4873_v62 }
  0xd4   :  { %3438 = vmatpush3.xpose.msra.mxu0 %v4742_v38  ;;  %3468 = vmatpush3.xpose.msra.mxu1 %v1315_v44  ;;  %v4865_v44 = vsub.f32 %v1175_v4, %v4827_v17  ;;  %v6375_v4 = vand.u32 4294901760, %v4804_v61  ;;  %6382 = vst [vmem:[#allocation35_spill] sm:$0xff] %v4923_v53  ;;  %v1455_v34 = vand.u32 4294901760, %v1454_v19  ;;  %v4936_v16 = vand.u32 4294901760, %v1166_v37  ;;  %6389 = vst [vmem:[#allocation39_spill] sm:$0xff] %v4961_v1 }
  0xd5   :  { %3439 = vmatprep.subr.mxu0 %v4752_v43  ;;  %3469 = vmatprep.subr.mxu1 %v1434_v20  ;;  %v1169_v20 = vsel %vm112_vm0, %v1090_v45, 0  ;;  %v1329_v45 = vand.u32 4294901760, %v1328_v18  ;;  %v1160_v26 = vsel %vm112_vm0, %v1087_v10, 0  ;;  %v4984_v10 = vsub.f32 %v1118_v13, %v4961_v1 }
  0xd6   :  { %v1335_v41 = vsub.f32 %v4804_v61, %v6375_v4  ;;  %v1448_v4 = vand.u32 4294901760, %v1447_v54  ;;  %v4900_v58 = vand.u32 4294901760, %v1169_v20  ;;  %6384 = vst [vmem:[#allocation36_spill] sm:$0xff] %v4936_v16 }
  0xd7   :  { %6393 = vst [vmem:[#allocation43_spill] sm:$0xff] %v4984_v10 }
  0xd8   :  { %3440 = vmatpush3.xpose.msra.mxu0 %v4770_v31  ;;  %3470 = vmatpush3.xpose.msra.mxu1 %v1322_v5  ;;  %6378 = vst [vmem:[#allocation32_spill] sm:$0xff] %v4900_v58  ;;  %v1088_v5 = vmul.f32 %v4882_v25, %v4882_v25  ;;  %v1336_v29 = vand.u32 4294901760, %v1335_v41  ;;  %v4921_v25 = vsub.f32 %v1124_v6, %v4887_v48  ;;  %v6383_v41 = vand.u32 4294901760, %v4865_v44 }
  0xd9   :  { %3441 = vmatprep.subr.mxu0 %v4781_v33  ;;  %3471 = vmatprep.subr.mxu1 %v1441_v0  ;;  %v6381_v0 = vand.u32 4294901760, %v4836_v51  ;;  %v4940_v19 = vsub.f32 %v1169_v20, %v4900_v58  ;;  %v6388_v20 = vand.u32 4294901760, %v4890_v8 }
  0xda   :  { %v1461_v6 = vsub.f32 %v4865_v44, %v6383_v41  ;;  %v4953_v41 = vld [vmem:[%s6061_s2 + $0x98] sm:$0xff] }
  0xdb   :  { %v1342_v54 = vsub.f32 %v4836_v51, %v6381_v0  ;;  %v1072_v0 = vmul.f32 %v4908_v23, %v4908_v23  ;;  %6387 = vst [vmem:[#allocation38_spill] sm:$0xff] %v4953_v41  ;;  %v1468_v23 = vsub.f32 %v4890_v8, %v6388_v20 }
  0xdc   :  { %3442 = vmatpush3.xpose.msra.mxu0 %v4798_v12  ;;  %3472 = vmatpush3.xpose.msra.mxu1 %v1329_v45  ;;  %v1163_v45 = vsel %vm112_vm0, %v1088_v5, 0  ;;  %v4956_v5 = vsub.f32 %v1121_v56, %v4923_v53  ;;  %v1071_v56 = vmul.f32 %v4945_v32, %v4945_v32  ;;  %v1462_v20 = vand.u32 4294901760, %v1461_v6 }
  0xdd   :  { %3443 = vmatprep.subr.mxu0 %v4827_v17  ;;  %3473 = vmatprep.subr.mxu1 %v1448_v4  ;;  %v1343_v18 = vand.u32 4294901760, %v1342_v54  ;;  %v1349_v4 = vsub.f32 %v4873_v62, %v6386_v11  ;;  %v4965_v11 = vand.u32 4294901760, %v1163_v45  ;;  %v1115_v22 = vsel %vm112_vm0, %v1072_v0, 0  ;;  %v4981_v0 = vld [vmem:[%s6061_s2 + $0x18] sm:$0xff] }
  0xde   :  { %v4974_v54 = vsub.f32 %v1166_v37, %v4936_v16  ;;  %6392 = vst [vmem:[#allocation42_spill] sm:$0xff] %v4981_v0  ;;  %v4989_v46 = vand.u32 4294901760, %v1115_v22  ;;  %v4991_v37 = vand.u32 4294901760, %v1160_v26  ;;  %v1112_v32 = vsel %vm112_vm0, %v1071_v56, 0 }
  0xdf   :  { %6390 = vst [vmem:[#allocation40_spill] sm:$0xff] %v4965_v11  ;;  %v1350_v39 = vand.u32 4294901760, %v1349_v4  ;;  %v4996_v4 = vld [vmem:[%s6061_s2 + $0x90] sm:$0xff]  ;;  %v5002_v7 = vsub.f32 %v1163_v45, %v4965_v11 }
  0xe0   :  { %3444 = vmatpush3.xpose.msra.mxu0 %v4838_v24  ;;  %3474 = vmatpush3.xpose.msra.mxu1 %v1336_v29  ;;  %6391 = vst [vmem:[#allocation41_spill] sm:$0xff] %v4974_v54  ;;  %v1086_v29 = vmul.f32 %v4953_v41, %v4953_v41  ;;  %6395 = vst [vmem:[#allocation44_spill] sm:$0xff] %v4989_v46  ;;  %v1469_v41 = vand.u32 4294901760, %v1468_v23  ;;  %v1070_v23 = vmul.f32 %v4981_v0, %v4981_v0  ;;  %v5017_v45 = vld [vmem:[%s6061_s2 + $0x10] sm:$0xff]  ;;  %v5031_v24 = vld [vmem:[%s6061_s2 + $0x88] sm:$0xff] }
  0xe1   :  { %3445 = vmatprep.subr.mxu0 %v4845_v2  ;;  %3475 = vmatprep.subr.mxu1 %v1455_v34  ;;  %v6394_v34 = vand.u32 4294901760, %v4921_v25  ;;  %6396 = vst [vmem:[#allocation45_spill] sm:$0xff] %v4991_v37  ;;  %6397 = vst [vmem:[#allocation46_spill] sm:$0xff] %v4996_v4  ;;  %v5020_v56 = vsub.f32 %v1115_v22, %v4989_v46 }
  0xe2   :  { %6398 = vst [vmem:[#allocation47_spill] sm:$0xff] %v5002_v7  ;;  %6400 = vst [vmem:[#allocation48_spill] sm:$0xff] %v5017_v45 }
  0xe3   :  { %v1356_v6 = vsub.f32 %v4921_v25, %v6394_v34  ;;  %v6399_v34 = vand.u32 4294901760, %v4940_v19  ;;  %6401 = vst [vmem:[#allocation49_spill] sm:$0xff] %v5020_v56  ;;  %6404 = vst [vmem:[#allocation52_spill] sm:$0xff] %v5031_v24 }
  0xe4   :  { %3446 = vmatpush3.xpose.msra.mxu0 %v4887_v48  ;;  %3476 = vmatpush3.xpose.msra.mxu1 %v1343_v18  ;;  %v1157_v48 = vsel %vm112_vm0, %v1086_v29, 0  ;;  %v1085_v18 = vmul.f32 %v4996_v4, %v4996_v4  ;;  %v5026_v29 = vsub.f32 %v1160_v26, %v4991_v37  ;;  %v6405_v4 = vand.u32 4294901760, %v4956_v5 }
  0xe5   :  { %3447 = vmatprep.subr.mxu0 %v4900_v58  ;;  %3477 = vmatprep.subr.mxu1 %v1462_v20  ;;  %v1475_v2 = vsub.f32 %v4940_v19, %v6399_v34  ;;  %v5022_v20 = vand.u32 4294901760, %v1112_v32  ;;  %v1357_v13 = vand.u32 4294901760, %v1356_v6  ;;  %v5037_v0 = vand.u32 4294901760, %v1157_v48  ;;  %v5053_v34 = vld [vmem:[%s6061_s2 + $0x8] sm:$0xff] }
  0xe6   :  { %6403 = vst [vmem:[#allocation51_spill] sm:$0xff] %v5026_v29  ;;  %v1363_v22 = vsub.f32 %v4956_v5, %v6405_v4  ;;  %v6406_v58 = vand.u32 4294901760, %v4974_v54  ;;  %v1154_v6 = vsel %vm112_vm0, %v1085_v18, 0  ;;  %v1084_v4 = vmul.f32 %v5031_v24, %v5031_v24  ;;  %6407 = vst [vmem:[#allocation53_spill] sm:$0xff] %v5053_v34  ;;  %v5066_v18 = vld [vmem:[%s6061_s2 + $0x80] sm:$0xff] }
  0xe7   :  { %6402 = vst [vmem:[#allocation50_spill] sm:$0xff] %v5022_v20  ;;  %v1476_v26 = vand.u32 4294901760, %v1475_v2  ;;  %v5056_v2 = vsub.f32 %v1112_v32, %v5022_v20  ;;  %6409 = vst [vmem:[#allocation54_spill] sm:$0xff] %v5066_v18  ;;  %v6410_v32 = vand.u32 4294901760, %v5002_v7 }
  0xe8   :  { %3448 = vmatpush3.xpose.msra.mxu0 %v4923_v53  ;;  %3478 = vmatpush3.xpose.msra.mxu1 %v1350_v39  ;;  %v1482_v17 = vsub.f32 %v4974_v54, %v6406_v58  ;;  %v1109_v53 = vsel %vm112_vm0, %v1070_v23, 0  ;;  %v1069_v39 = vmul.f32 %v5017_v45, %v5017_v45  ;;  %v6408_v58 = vand.u32 4294901760, %v4984_v10 }
  0xe9   :  { %3449 = vmatprep.subr.mxu0 %v4936_v16  ;;  %3479 = vmatprep.subr.mxu1 %v1469_v41  ;;  %v1364_v24 = vand.u32 4294901760, %v1363_v22  ;;  %v1489_v16 = vsub.f32 %v5002_v7, %v6410_v32  ;;  %v5072_v54 = vand.u32 4294901760, %v1109_v53  ;;  %v5078_v23 = vand.u32 4294901760, %v1154_v6 }
  0xea   :  { %v1370_v41 = vsub.f32 %v4984_v10, %v6408_v58  ;;  %v5075_v58 = vsub.f32 %v1157_v48, %v5037_v0  ;;  %v1483_v45 = vand.u32 4294901760, %v1482_v17  ;;  %v1106_v10 = vsel %vm112_vm0, %v1069_v39, 0  ;;  %v5089_v48 = vld [vmem:[%s6061_s2] sm:$0xff] }
  0xeb   :  { %6411 = vst [vmem:[#allocation55_spill] sm:$0xff] %v5072_v54  ;;  %6413 = vst [vmem:[#allocation57_spill] sm:$0xff] %v5078_v23  ;;  %v1151_v22 = vsel %vm112_vm0, %v1084_v4, 0  ;;  %v1083_v32 = vmul.f32 %v5066_v18, %v5066_v18  ;;  %v6415_v17 = vand.u32 4294901760, %v5020_v56  ;;  %v6416_v39 = vand.u32 4294901760, %v5026_v29 }
  0xec   :  { %3450 = vmatpush3.xpose.msra.mxu0 %v4961_v1  ;;  %3480 = vmatpush3.xpose.msra.mxu1 %v1357_v13  ;;  %6412 = vst [vmem:[#allocation56_spill] sm:$0xff] %v5075_v58  ;;  %v1068_v13 = vmul.f32 %v5053_v34, %v5053_v34  ;;  %6414 = vst [vmem:[#allocation58_spill] sm:$0xff] %v5089_v48  ;;  %v1490_v4 = vand.u32 4294901760, %v1489_v16  ;;  %v5100_v18 = vsub.f32 %v1109_v53, %v5072_v54 }
  0xed   :  { %3451 = vmatprep.subr.mxu0 %v4965_v11  ;;  %3481 = vmatprep.subr.mxu1 %v1476_v26  ;;  %v1371_v11 = vand.u32 4294901760, %v1370_v41  ;;  %v1377_v26 = vsub.f32 %v5020_v56, %v6415_v17  ;;  %v1496_v1 = vsub.f32 %v5026_v29, %v6416_v39  ;;  %v5102_v7 = vand.u32 4294901760, %v1106_v10 }
  0xee   :  { %v5106_v17 = vand.u32 4294901760, %v1151_v22  ;;  %v1103_v39 = vsel %vm112_vm0, %v1068_v13, 0  ;;  %v5110_v34 = vsub.f32 %v1154_v6, %v5078_v23  ;;  %v1067_v16 = vmul.f32 %v5089_v48, %v5089_v48 }
  0xef   :  { %v1148_v53 = vsel %vm112_vm0, %v1083_v32, 0  ;;  %v6417_v29 = vand.u32 4294901760, %v5056_v2  ;;  %v6418_v6 = vand.u32 4294901760, %v5075_v58  ;;  %v6198_v32 = vand.u32 4294901760, %v5100_v18 }
  0xf0   :  { %3452 = vmatpush3.xpose.msra.mxu0 %v4989_v46  ;;  %3482 = vmatpush3.xpose.msra.mxu1 %v1364_v24  ;;  %v1378_v24 = vand.u32 4294901760, %v1377_v26  ;;  %v1497_v46 = vand.u32 4294901760, %v1496_v1  ;;  %v5129_v1 = vand.u32 4294901760, %v1148_v53 }
  0xf1   :  { %3453 = vmatprep.subr.mxu0 %v4991_v37  ;;  %3483 = vmatprep.subr.mxu1 %v1483_v45  ;;  %v1384_v41 = vsub.f32 %v5056_v2, %v6417_v29  ;;  %v5120_v45 = vsub.f32 %v1106_v10, %v5102_v7  ;;  %v1503_v13 = vsub.f32 %v5075_v58, %v6418_v6  ;;  %v5125_v37 = vand.u32 4294901760, %v1103_v39 }
  0xf2   :  { %v5134_v10 = vsub.f32 %v1151_v22, %v5106_v17 }
  0xf3   :  { %v1385_v26 = vand.u32 4294901760, %v1384_v41  ;;  %v5138_v6 = vsub.f32 %v1103_v39, %v5125_v37  ;;  %v6201_v29 = vand.u32 4294901760, %v5120_v45  ;;  %v1504_v22 = vand.u32 4294901760, %v1503_v13 }
  0xf4   :  { %3454 = vmatpush3.xpose.msra.mxu0 %v5022_v20  ;;  %3484 = vmatpush3.xpose.msra.mxu1 %v1371_v11  ;;  %v1100_v11 = vsel %vm112_vm0, %v1067_v16, 0  ;;  %v6420_v41 = vand.u32 4294901760, %v5110_v34  ;;  %v5152_v39 = vsub.f32 %v1148_v53, %v5129_v1 }
  0xf5   :  { %3455 = vmatprep.subr.mxu0 %v5037_v0  ;;  %3485 = vmatprep.subr.mxu1 %v1490_v4  ;;  %6419 = vst [vmem:[#allocation59_spill] sm:$0xff] %v5138_v6  ;;  %v1391_v4 = vsub.f32 %v5100_v18, %v6198_v32  ;;  %v5143_v48 = vand.u32 4294901760, %v1100_v11  ;;  %v6205_v13 = vand.u32 4294901760, %v5138_v6 }
  0xf6   :  { %v1510_v16 = vsub.f32 %v5110_v34, %v6420_v41 }
  0xf7   :  { %v1392_v32 = vand.u32 4294901760, %v1391_v4  ;;  %v1405_v4 = vsub.f32 %v5138_v6, %v6205_v13  ;;  %v6432_v13 = vld [vmem:[#allocation39_spill] sm:$0xff] }
  0xf8   :  { %3456 = vmatpush3.xpose.msra.mxu0 %v5072_v54  ;;  %3486 = vmatpush3.xpose.msra.mxu1 %v1378_v24  ;;  %v6202_v24 = vand.u32 4294901760, %v5134_v10  ;;  %v5156_v54 = vsub.f32 %v1100_v11, %v5143_v48  ;;  %v1511_v41 = vand.u32 4294901760, %v1510_v16 }
  0xf9   :  { %3457 = vmatprep.subr.mxu0 %v5078_v23  ;;  %3487 = vmatprep.subr.mxu1 %v1497_v46  ;;  %v1398_v46 = vsub.f32 %v5120_v45, %v6201_v29 }
  0xfa   :  { %v1517_v53 = vsub.f32 %v5134_v10, %v6202_v24  ;;  %v6203_v29 = vand.u32 4294901760, %v5156_v54  ;;  %v1406_v24 = vand.u32 4294901760, %v1405_v4  ;;  %v6424_v4 = vld [vmem:[#allocation27_spill] sm:$0xff] }
  0xfb   :  { %v1399_v11 = vand.u32 4294901760, %v1398_v46 }
  0xfc   :  { %3458 = vmatpush3.xpose.msra.mxu0 %v5102_v7  ;;  %3488 = vmatpush3.xpose.msra.mxu1 %v1385_v26  ;;  %v6204_v26 = vand.u32 4294901760, %v5152_v39 }
  0xfd   :  { %3459 = vmatprep.subr.mxu0 %v5106_v17  ;;  %3489 = vmatprep.subr.mxu1 %v1504_v22  ;;  %v1518_v22 = vand.u32 4294901760, %v1517_v53  ;;  %v6422_v53 = vld [vmem:[#allocation26_spill] sm:$0xff] }
  0xfe   :  { %v1524_v16 = vsub.f32 %v5152_v39, %v6204_v26  ;;  %v6431_v26 = vld [vmem:[#allocation36_spill] sm:$0xff] }
 0x100   :  { %3460 = vmatpush3.xpose.msra.mxu0 %v5125_v37  ;;  %3490 = vmatpush3.xpose.msra.mxu1 %v1392_v32  ;;  %v1412_v32 = vsub.f32 %v5156_v54, %v6203_v29  ;;  %v1525_v46 = vand.u32 4294901760, %v1524_v16  ;;  %v6426_v16 = vld [vmem:[#allocation31_spill] sm:$0xff] }
 0x101   :  { %3461 = vmatprep.subr.mxu0 %v5129_v1  ;;  %3491 = vmatprep.subr.mxu1 %v1511_v41  ;;  %v6430_v29 = vld [vmem:[#allocation51_spill] sm:$0xff] }
 0x102   :  { %v1413_v41 = vand.u32 4294901760, %v1412_v32  ;;  %v6427_v32 = vld [vmem:[#allocation47_spill] sm:$0xff] }
 0x104   :  { %3462 = vmatpush3.xpose.msra.mxu0 %v5143_v48  ;;  %3492 = vmatpush3.xpose.msra.mxu1 %v1399_v11  ;;  %v6423_v11 = vld [vmem:[#allocation41_spill] sm:$0xff] }
 0x105   :  { %3493 = vmatprep.subr.mxu1 %v1518_v22  ;;  %3499 = vmatprep.subr.mxu0 %v4637_v27  ;;  %v6425_v22 = vld [vmem:[#allocation43_spill] sm:$0xff] }
 0x107   :  { %3464 = vmatmul.mubr.f32.vlgmr.msra.gmra.mxu0 %v6364_v55  ;;  %v6433_v55 = vld [vmem:[#allocation40_spill] sm:$0xff] }
 0x108   :  { %3494 = vmatpush3.xpose.msra.mxu1 %v1406_v24  ;;  %3500 = vmatpush3.xpose.msra.mxu0 %v4655_v36  ;;  %v6421_v24 = vld [vmem:[#allocation25_spill] sm:$0xff] }
 0x109   :  { %3495 = vmatprep.subr.mxu1 %v1525_v46  ;;  %3501 = vmatprep.subr.mxu0 %v4668_v40  ;;  %v6428_v46 = vld [vmem:[#allocation32_spill] sm:$0xff] }
 0x10a   :  { %3531 = vmatprep.mubr.f32.mxu0 %v4265_v35 }
 0x10c   :  { %3496 = vmatpush3.xpose.msra.mxu1 %v1413_v41  ;;  %3502 = vmatpush3.xpose.msra.mxu0 %v4683_v47  ;;  %v6429_v41 = vld [vmem:[#allocation35_spill] sm:$0xff] }
 0x10d   :  { %3503 = vmatprep.subr.mxu0 %v4716_v57  ;;  %3533 = vmatprep.subr.mxu1 %v4609_v3 }
 0x10f   :  { %3498 = vmatmul.mubr.msk.f32.vlgmr.msra.gmra.mxu1 %vm112_vm0, %v6295_v59 }
 0x110   :  { %3504 = vmatpush3.xpose.msra.mxu0 %v4725_v21  ;;  %3534 = vmatpush3.xpose.msra.mxu1 %v4623_v52 }
 0x111   :  { %3505 = vmatprep.subr.mxu0 %v4757_v15  ;;  %3535 = vmatprep.subr.mxu1 %v4634_v42 }
 0x112   :  { %3565 = vmatprep.mubr.f32.mxu1 %v4304_v49 }
 0x114   :  { %3506 = vmatpush3.xpose.msra.mxu0 %v4779_v28  ;;  %3536 = vmatpush3.xpose.msra.mxu1 %v4644_v9 }
 0x115   :  { %3507 = vmatprep.subr.mxu0 %v4791_v14  ;;  %3537 = vmatprep.subr.mxu1 %v4673_v30 }
 0x118   :  { %3508 = vmatpush3.xpose.msra.mxu0 %v4804_v61  ;;  %3538 = vmatpush3.xpose.msra.mxu1 %v4693_v63 }
 0x119   :  { %3509 = vmatprep.subr.mxu0 %v4819_v60  ;;  %3539 = vmatprep.subr.mxu1 %v4712_v50 }
 0x11c   :  { %3510 = vmatpush3.xpose.msra.mxu0 %v4836_v51  ;;  %3540 = vmatpush3.xpose.msra.mxu1 %v4742_v38 }
 0x11d   :  { %3511 = vmatprep.subr.mxu0 %v4865_v44  ;;  %3541 = vmatprep.subr.mxu1 %v4752_v43 }
 0x120   :  { %3512 = vmatpush3.xpose.msra.mxu0 %v4873_v62  ;;  %3542 = vmatpush3.xpose.msra.mxu1 %v4770_v31 }
 0x121   :  { %3513 = vmatprep.subr.mxu0 %v4890_v8  ;;  %3543 = vmatprep.subr.mxu1 %v4781_v33 }
 0x124   :  { %3514 = vmatpush3.xpose.msra.mxu0 %v4921_v25  ;;  %3544 = vmatpush3.xpose.msra.mxu1 %v4798_v12 }
 0x125   :  { %3515 = vmatprep.subr.mxu0 %v4940_v19  ;;  %3545 = vmatprep.subr.mxu1 %v6421_v24 }
 0x128   :  { %3516 = vmatpush3.xpose.msra.mxu0 %v4956_v5  ;;  %3546 = vmatpush3.xpose.msra.mxu1 %v6422_v53 }
 0x129   :  { %3517 = vmatprep.subr.mxu0 %v6423_v11  ;;  %3547 = vmatprep.subr.mxu1 %v6424_v4 }
 0x12c   :  { %3518 = vmatpush3.xpose.msra.mxu0 %v6425_v22  ;;  %3548 = vmatpush3.xpose.msra.mxu1 %v6426_v16 }
 0x12d   :  { %3519 = vmatprep.subr.mxu0 %v6427_v32  ;;  %3549 = vmatprep.subr.mxu1 %v6428_v46  ;;  %v6434_v32 = vld [vmem:[#allocation44_spill] sm:$0xff] }
 0x130   :  { %3520 = vmatpush3.xpose.msra.mxu0 %v5020_v56  ;;  %3550 = vmatpush3.xpose.msra.mxu1 %v6429_v41  ;;  %v6435_v56 = vld [vmem:[#allocation45_spill] sm:$0xff] }
 0x131   :  { %3521 = vmatprep.subr.mxu0 %v6430_v29  ;;  %3551 = vmatprep.subr.mxu1 %v6431_v26 }
 0x134   :  { %3522 = vmatpush3.xpose.msra.mxu0 %v5056_v2  ;;  %3552 = vmatpush3.xpose.msra.mxu1 %v6432_v13 }
 0x135   :  { %3523 = vmatprep.subr.mxu0 %v5075_v58  ;;  %3553 = vmatprep.subr.mxu1 %v6433_v55  ;;  %v6436_v58 = vld [vmem:[#allocation55_spill] sm:$0xff] }
 0x138   :  { %3524 = vmatpush3.xpose.msra.mxu0 %v5100_v18  ;;  %3554 = vmatpush3.xpose.msra.mxu1 %v6434_v32 }
 0x139   :  { %3525 = vmatprep.subr.mxu0 %v5110_v34  ;;  %3555 = vmatprep.subr.mxu1 %v6435_v56 }
 0x13c   :  { %3526 = vmatpush3.xpose.msra.mxu0 %v5120_v45  ;;  %3556 = vmatpush3.xpose.msra.mxu1 %v5022_v20  ;;  %v6437_v20 = vand.u32 4294901760, %v4637_v27  ;;  %v6440_v27 = vand.u32 4294901760, %v4683_v47  ;;  %v6444_v47 = vand.u32 4294901760, %v4779_v28 }
 0x13d   :  { %3527 = vmatprep.subr.mxu0 %v5134_v10  ;;  %3557 = vmatprep.subr.mxu1 %v5037_v0 }
 0x140   :  { %3528 = vmatpush3.xpose.msra.mxu0 %v5138_v6  ;;  %3558 = vmatpush3.xpose.msra.mxu1 %v6436_v58  ;;  %v6438_v6 = vand.u32 4294901760, %v4655_v36  ;;  %v6442_v36 = vand.u32 4294901760, %v4725_v21  ;;  %v6453_v21 = vand.u32 4294901760, %v4940_v19  ;;  %v6465_v19 = vld [vmem:[#allocation56_spill] sm:$0xff] }
 0x141   :  { %3529 = vmatprep.subr.mxu0 %v5152_v39  ;;  %3559 = vmatprep.subr.mxu1 %v5078_v23  ;;  %v6439_v23 = vand.u32 4294901760, %v4668_v40  ;;  %v6443_v40 = vand.u32 4294901760, %v4757_v15  ;;  %v6456_v15 = vand.u32 4294901760, %v6425_v22 }
 0x144   :  { %3530 = vmatpush3.xpose.msra.mxu0 %v5156_v54  ;;  %3560 = vmatpush3.xpose.msra.mxu1 %v5102_v7 }
 0x145   :  { %3561 = vmatprep.subr.mxu1 %v5106_v17  ;;  %3567 = vmatprep.subr.mxu0 %v6437_v20  ;;  %v6441_v20 = vand.u32 4294901760, %v4716_v57  ;;  %v6448_v57 = vand.u32 4294901760, %v4836_v51 }
 0x147   :  { %3532 = vmatmul.mubr.f32.vlgmr.msra.gmra.mxu0 %v4265_v35 }
 0x148   :  { %3562 = vmatpush3.xpose.msra.mxu1 %v5125_v37  ;;  %3568 = vmatpush3.xpose.msra.mxu0 %v6438_v6 }
 0x149   :  { %3563 = vmatprep.subr.mxu1 %v5129_v1  ;;  %3569 = vmatprep.subr.mxu0 %v6439_v23 }
 0x14a   :  { %3599 = vmatprep.mubr.msk.f32.mxu0 %vm112_vm0, %v6295_v59 }
 0x14c   :  { %3564 = vmatpush3.xpose.msra.mxu1 %v5143_v48  ;;  %3570 = vmatpush3.xpose.msra.mxu0 %v6440_v27  ;;  %v6472_v27 = vand.u32 4294901760, %v5120_v45 }
 0x14d   :  { %3571 = vmatprep.subr.mxu0 %v6441_v20  ;;  %3601 = vmatprep.subr.mxu1 %v4609_v3  ;;  %v6445_v3 = vand.u32 4294901760, %v4791_v14  ;;  %v6473_v20 = vld [vmem:[#allocation50_spill] sm:$0xff] }
 0x14f   :  { %3566 = vmatmul.mubr.f32.vlgmr.msra.gmra.mxu1 %v4304_v49 }
 0x150   :  { %3572 = vmatpush3.xpose.msra.mxu0 %v6442_v36  ;;  %3602 = vmatpush3.xpose.msra.mxu1 %v4623_v52  ;;  %v6446_v52 = vand.u32 4294901760, %v4804_v61  ;;  %v3883_v61 = vld [vmem:[%s6060_s1 + $0xf8] sm:$0xff]  ;;  %v3888_v36 = vld [vmem:[%s6060_s1 + $0x68] sm:$0xff] }
 0x151   :  { %3573 = vmatprep.subr.mxu0 %v6443_v40  ;;  %3603 = vmatprep.subr.mxu1 %v4634_v42  ;;  %v6447_v42 = vand.u32 4294901760, %v4819_v60  ;;  %v6462_v60 = vld [vmem:[#allocation13_spill] sm:$0xff] }
 0x152   :  { %3633 = vmatprep.mubr.msk.f32.mxu1 %vm112_vm0, %v6295_v59  ;;  %v2081_v51 = vmul.f32 %v3883_v61, %v6462_v60  ;;  %v6474_v40 = vld [vmem:[#allocation9_spill] sm:$0xff] }
 0x154   :  { %3574 = vmatpush3.xpose.msra.mxu0 %v6444_v47  ;;  %3604 = vmatpush3.xpose.msra.mxu1 %v4644_v9  ;;  %v6449_v9 = vand.u32 4294901760, %v4865_v44  ;;  %v6463_v44 = vand.u32 4294901760, %v5056_v2  ;;  %v2176_v23 = vsel %vm112_vm0, %v2081_v51, 0  ;;  %v3885_v2 = vld [vmem:[%s6060_s1 + $0xf0] sm:$0xff]  ;;  %v2063_v47 = vmul.f32 %v3888_v36, %v6474_v40  ;;  %v3895_v40 = vld [vmem:[%s6060_s1 + $0xc8] sm:$0xff] }
 0x155   :  { %3575 = vmatprep.subr.mxu0 %v6445_v3  ;;  %3605 = vmatprep.subr.mxu1 %v4673_v30  ;;  %v6450_v30 = vand.u32 4294901760, %v4873_v62  ;;  %v3884_v62 = vld [vmem:[%s6060_s1 + $0x78] sm:$0xff]  ;;  %v6475_v3 = vand.u32 4294901760, %v5134_v10 }
 0x156   :  { %v2122_v10 = vsel %vm112_vm0, %v2063_v47, 0 }
 0x157   :  { %v5410_v60 = vand.u32 4294901760, %v2122_v10 }
 0x158   :  { %3576 = vmatpush3.xpose.msra.mxu0 %v6446_v52  ;;  %3606 = vmatpush3.xpose.msra.mxu1 %v4693_v63  ;;  %v6451_v63 = vand.u32 4294901760, %v4890_v8 }
 0x159   :  { %3577 = vmatprep.subr.mxu0 %v6447_v42  ;;  %3607 = vmatprep.subr.mxu1 %v4712_v50  ;;  %v6452_v50 = vand.u32 4294901760, %v4921_v25  ;;  %v6464_v25 = vld [vmem:[#allocation6_spill] sm:$0xff] }
 0x15a   :  { %v2065_v8 = vmul.f32 %v3884_v62, %v6464_v25  ;;  %v3889_v42 = vld [vmem:[%s6060_s1 + $0xe0] sm:$0xff] }
 0x15c   :  { %3578 = vmatpush3.xpose.msra.mxu0 %v6448_v57  ;;  %3608 = vmatpush3.xpose.msra.mxu1 %v4742_v38  ;;  %v6454_v38 = vand.u32 4294901760, %v4956_v5  ;;  %v6466_v5 = vand.u32 4294901760, %v6465_v19  ;;  %v6476_v57 = vld [vmem:[#allocation21_spill] sm:$0xff]  ;;  %v6484_v19 = vld [vmem:[#allocation12_spill] sm:$0xff] }
 0x15d   :  { %3579 = vmatprep.subr.mxu0 %v6449_v9  ;;  %3609 = vmatprep.subr.mxu1 %v4752_v43  ;;  %v6455_v43 = vand.u32 4294901760, %v6423_v11  ;;  %v2128_v11 = vsel %vm112_vm0, %v2065_v8, 0  ;;  %v2078_v9 = vmul.f32 %v3889_v42, %v6476_v57  ;;  %v3892_v8 = vld [vmem:[%s6060_s1 + $0x58] sm:$0xff] }
 0x160   :  { %3580 = vmatpush3.xpose.msra.mxu0 %v6450_v30  ;;  %3610 = vmatpush3.xpose.msra.mxu1 %v4770_v31  ;;  %v6457_v31 = vld [vmem:[#allocation47_spill] sm:$0xff] }
 0x161   :  { %3581 = vmatprep.subr.mxu0 %v6451_v63  ;;  %3611 = vmatprep.subr.mxu1 %v4781_v33  ;;  %v6458_v28 = vand.u32 4294901760, %v6457_v31  ;;  %v6459_v33 = vld [vmem:[#allocation49_spill] sm:$0xff]  ;;  %v6477_v63 = vld [vmem:[#allocation59_spill] sm:$0xff] }
 0x162   :  { %v6460_v14 = vand.u32 4294901760, %v6459_v33  ;;  %v3890_v31 = vld [vmem:[%s6060_s1 + $0x60] sm:$0xff] }
 0x164   :  { %3582 = vmatpush3.xpose.msra.mxu0 %v6452_v50  ;;  %3612 = vmatpush3.xpose.msra.mxu1 %v4798_v12  ;;  %v6461_v12 = vand.u32 4294901760, %v6430_v29  ;;  %v6467_v29 = vld [vmem:[#allocation15_spill] sm:$0xff]  ;;  %v6478_v50 = vand.u32 4294901760, %v6477_v63  ;;  %v6489_v63 = vld [vmem:[#allocation17_spill] sm:$0xff] }
 0x165   :  { %3583 = vmatprep.subr.mxu0 %v6453_v21  ;;  %3613 = vmatprep.subr.mxu1 %v6421_v24  ;;  %v2080_v6 = vmul.f32 %v3885_v2, %v6467_v29  ;;  %v3893_v2 = vld [vmem:[%s6060_s1 + $0xd0] sm:$0xff]  ;;  %v6485_v29 = vld [vmem:[#allocation14_spill] sm:$0xff] }
 0x167   :  { %v2173_v22 = vsel %vm112_vm0, %v2080_v6, 0  ;;  %v2076_v6 = vmul.f32 %v3893_v2, %v6485_v29 }
 0x168   :  { %3584 = vmatpush3.xpose.msra.mxu0 %v6454_v38  ;;  %3614 = vmatpush3.xpose.msra.mxu1 %v6422_v53  ;;  %v6469_v53 = vand.u32 4294901760, %v5100_v18  ;;  %v6479_v38 = vand.u32 4294901760, %v5152_v39  ;;  %v3891_v39 = vld [vmem:[%s6060_s1 + $0xd8] sm:$0xff] }
 0x169   :  { %3585 = vmatprep.subr.mxu0 %v6455_v43  ;;  %3615 = vmatprep.subr.mxu1 %v6424_v4  ;;  %v6470_v4 = vand.u32 4294901760, %v5110_v34  ;;  %v5363_v34 = vand.u32 4294901760, %v2173_v22  ;;  %v6480_v43 = vld [vmem:[#allocation57_spill] sm:$0xff] }
 0x16b   :  { %v5391_v21 = vsub.f32 %v2173_v22, %v5363_v34 }
 0x16c   :  { %3586 = vmatpush3.xpose.msra.mxu0 %v6456_v15  ;;  %3616 = vmatpush3.xpose.msra.mxu1 %v6426_v16  ;;  %v3887_v16 = vld [vmem:[%s6060_s1 + $0xe8] sm:$0xff] }
 0x16d   :  { %3587 = vmatprep.subr.mxu0 %v6458_v28  ;;  %3617 = vmatprep.subr.mxu1 %v6428_v46  ;;  %v6471_v46 = vld [vmem:[#allocation8_spill] sm:$0xff]  ;;  %v6481_v28 = vld [vmem:[#allocation10_spill] sm:$0xff]  ;;  %v6224_v25 = vand.u32 4294901760, %v5391_v21 }
 0x16e   :  { %v2079_v18 = vmul.f32 %v3887_v16, %v6471_v46 }
 0x16f   :  { %v2409_v16 = vsub.f32 %v5391_v21, %v6224_v25  ;;  %v6519_v25 = vld [vmem:[#allocation46_spill] sm:$0xff] }
 0x170   :  { %3588 = vmatpush3.xpose.msra.mxu0 %v6460_v14  ;;  %3618 = vmatpush3.xpose.msra.mxu1 %v6429_v41  ;;  %v5357_v41 = vand.u32 4294901760, %v2128_v11  ;;  %v2170_v52 = vsel %vm112_vm0, %v2079_v18, 0  ;;  %v2167_v14 = vsel %vm112_vm0, %v2078_v9, 0  ;;  %v3896_v9 = vld [vmem:[%s6060_s1 + $0x48] sm:$0xff] }
 0x171   :  { %3589 = vmatprep.subr.mxu0 %v6461_v12  ;;  %3619 = vmatprep.subr.mxu1 %v6431_v26  ;;  %v6468_v26 = vld [vmem:[#allocation7_spill] sm:$0xff]  ;;  %v5396_v15 = vand.u32 4294901760, %v2170_v52 }
 0x172   :  { %v5383_v30 = vsub.f32 %v2128_v11, %v5357_v41  ;;  %v6482_v12 = vld [vmem:[#allocation11_spill] sm:$0xff]  ;;  %v6486_v11 = vld [vmem:[#allocation16_spill] sm:$0xff] }
 0x173   :  { %v2077_v61 = vmul.f32 %v3891_v39, %v6482_v12 }
 0x174   :  { %3590 = vmatpush3.xpose.msra.mxu0 %v6463_v44  ;;  %3620 = vmatpush3.xpose.msra.mxu1 %v6432_v13  ;;  %v3886_v13 = vld [vmem:[%s6060_s1 + $0x70] sm:$0xff]  ;;  %v6225_v51 = vand.u32 4294901760, %v5383_v30  ;;  %v6483_v44 = vand.u32 4294901760, %v5156_v54  ;;  %v5426_v54 = vand.u32 4294901760, %v2167_v14 }
 0x175   :  { %3591 = vmatprep.subr.mxu0 %v6466_v5  ;;  %3621 = vmatprep.subr.mxu1 %v6433_v55  ;;  %v2064_v24 = vmul.f32 %v3886_v13, %v6468_v26  ;;  %v5346_v55 = vand.u32 4294901760, %v2176_v23  ;;  %v2061_v5 = vmul.f32 %v3892_v8, %v6484_v19  ;;  %v2164_v26 = vsel %vm112_vm0, %v2077_v61, 0 }
 0x177   :  { %v2116_v18 = vsel %vm112_vm0, %v2061_v5, 0 }
 0x178   :  { %3592 = vmatpush3.xpose.msra.mxu0 %v6469_v53  ;;  %3622 = vmatpush3.xpose.msra.mxu1 %v6434_v32  ;;  %v2125_v32 = vsel %vm112_vm0, %v2064_v24, 0  ;;  %v2290_v24 = vsub.f32 %v5383_v30, %v6225_v51  ;;  %v3894_v53 = vld [vmem:[%s6060_s1 + $0x50] sm:$0xff] }
 0x179   :  { %3593 = vmatprep.subr.mxu0 %v6470_v4  ;;  %3623 = vmatprep.subr.mxu1 %v6435_v56  ;;  %v5366_v56 = vsub.f32 %v2176_v23, %v5346_v55  ;;  %v5375_v45 = vand.u32 4294901760, %v2125_v32  ;;  %v5430_v23 = vsub.f32 %v2170_v52, %v5396_v15  ;;  %v2060_v4 = vmul.f32 %v3894_v53, %v6486_v11 }
 0x17a   :  { %v5475_v52 = vand.u32 4294901760, %v2116_v18 }
 0x17b   :  { %v5403_v33 = vsub.f32 %v2125_v32, %v5375_v45  ;;  %v5460_v32 = vand.u32 4294901760, %v2164_v26  ;;  %v2113_v57 = vsel %vm112_vm0, %v2060_v4, 0 }
 0x17c   :  { %3594 = vmatpush3.xpose.msra.mxu0 %v6472_v27  ;;  %3624 = vmatpush3.xpose.msra.mxu1 %v6473_v20  ;;  %v6219_v27 = vand.u32 4294901760, %v5430_v23  ;;  %v5465_v20 = vsub.f32 %v2167_v14, %v5426_v54  ;;  %v2410_v14 = vand.u32 4294901760, %v2409_v16  ;;  %v5502_v61 = vand.u32 4294901760, %v2113_v57 }
 0x17d   :  { %3595 = vmatprep.subr.mxu0 %v6475_v3  ;;  %3625 = vmatprep.subr.mxu1 %v5037_v0  ;;  %v6226_v0 = vand.u32 4294901760, %v5366_v56  ;;  %v6222_v13 = vand.u32 4294901760, %v5403_v33  ;;  %v6488_v3 = vld [vmem:[#allocation24_spill] sm:$0xff]  ;;  %v5500_v12 = vsub.f32 %v2164_v26, %v5460_v32  ;;  %v5508_v8 = vsub.f32 %v2116_v18, %v5475_v52  ;;  %v6491_v26 = vld [vmem:[#allocation22_spill] sm:$0xff] }
 0x17e   :  { %v6217_v39 = vand.u32 4294901760, %v5465_v20  ;;  %v5532_v16 = vsub.f32 %v2113_v57, %v5502_v61 }
 0x17f   :  { %v2402_v62 = vsub.f32 %v5366_v56, %v6226_v0  ;;  %v2297_v36 = vsub.f32 %v5403_v33, %v6222_v13 }
 0x180   :  { %3596 = vmatpush3.xpose.msra.mxu0 %v6478_v50  ;;  %3626 = vmatpush3.xpose.msra.mxu1 %v6436_v58  ;;  %v2062_v58 = vmul.f32 %v3890_v31, %v6481_v28  ;;  %v2059_v50 = vmul.f32 %v3896_v9, %v6489_v63  ;;  %v3897_v31 = vld [vmem:[%s6060_s1 + $0xc0] sm:$0xff]  ;;  %v6490_v28 = vld [vmem:[#allocation19_spill] sm:$0xff]  ;;  %v2423_v11 = vsub.f32 %v5465_v20, %v6217_v39 }
 0x181   :  { %3597 = vmatprep.subr.mxu0 %v6479_v38  ;;  %3627 = vmatprep.subr.mxu1 %v6480_v43  ;;  %v2403_v22 = vand.u32 4294901760, %v2402_v62  ;;  %v2298_v62 = vand.u32 4294901760, %v2297_v36  ;;  %v6494_v36 = vld [vmem:[#allocation18_spill] sm:$0xff]  ;;  %v6503_v39 = vld [vmem:[#allocation33_spill] sm:$0xff] }
 0x182   :  { %v2110_v5 = vsel %vm112_vm0, %v2059_v50, 0 }
 0x183   :  { %v5534_v18 = vand.u32 4294901760, %v2110_v5 }
 0x184   :  { %3598 = vmatpush3.xpose.msra.mxu0 %v6483_v44  ;;  %3628 = vmatpush3.xpose.msra.mxu1 %v5102_v7  ;;  %v2119_v7 = vsel %vm112_vm0, %v2062_v58, 0  ;;  %v2074_v58 = vmul.f32 %v3897_v31, %v6490_v28  ;;  %v6496_v31 = vld [vmem:[#allocation23_spill] sm:$0xff] }
 0x185   :  { %3629 = vmatprep.subr.mxu1 %v5106_v17  ;;  %3635 = vmatprep.subr.mxu0 %v5346_v55  ;;  %v5441_v17 = vsub.f32 %v2122_v10, %v5410_v60  ;;  %v5455_v46 = vand.u32 4294901760, %v2119_v7  ;;  %v2291_v10 = vand.u32 4294901760, %v2290_v24  ;;  %6493 = vst [vmem:[#allocation26_spill] sm:$0xff] %v5534_v18 }
 0x186   :  { %v2155_v2 = vsel %vm112_vm0, %v2074_v58, 0  ;;  %v2424_v58 = vand.u32 4294901760, %v2423_v11 }
 0x187   :  { %3600 = vmatmul.mubr.msk.f32.vlgmr.msra.gmra.mxu0 %vm112_vm0, %v6295_v59  ;;  %v6218_v42 = vand.u32 4294901760, %v5441_v17  ;;  %v5486_v38 = vsub.f32 %v2119_v7, %v5455_v46  ;;  %v5543_v9 = vand.u32 4294901760, %v2155_v2 }
 0x188   :  { %3630 = vmatpush3.xpose.msra.mxu1 %v5125_v37  ;;  %3636 = vmatpush3.xpose.msra.mxu0 %v5357_v41  ;;  %v2161_v37 = vsel %vm112_vm0, %v2076_v6, 0  ;;  %v3898_v6 = vld [vmem:[%s6060_s1 + $0x40] sm:$0xff] }
 0x189   :  { %3631 = vmatprep.subr.mxu1 %v5129_v1  ;;  %3637 = vmatprep.subr.mxu0 %v5363_v34  ;;  %v6487_v1 = vld [vmem:[#allocation20_spill] sm:$0xff]  ;;  %v5488_v43 = vand.u32 4294901760, %v2161_v37  ;;  %v2304_v19 = vsub.f32 %v5441_v17, %v6218_v42  ;;  %v6215_v7 = vand.u32 4294901760, %v5486_v38  ;;  %v2058_v24 = vmul.f32 %v3898_v6, %v6491_v26  ;;  %6495 = vst [vmem:[#allocation41_spill] sm:$0xff] %v5543_v9 }
 0x18a   :  { %v2075_v47 = vmul.f32 %v3895_v40, %v6487_v1  ;;  %3667 = vmatprep.mubr.f32.mxu0 %v6488_v3  ;;  %v3901_v26 = vld [vmem:[%s6060_s1 + $0xb0] sm:$0xff] }
 0x18b   :  { %v5518_v29 = vsub.f32 %v2161_v37, %v5488_v43  ;;  %v3899_v37 = vld [vmem:[%s6060_s1 + $0xb8] sm:$0xff]  ;;  %v2305_v1 = vand.u32 4294901760, %v2304_v19  ;;  %v2311_v57 = vsub.f32 %v5486_v38, %v6215_v7  ;;  %v2107_v50 = vsel %vm112_vm0, %v2058_v24, 0 }
 0x18c   :  { %3632 = vmatpush3.xpose.msra.mxu1 %v5143_v48  ;;  %3638 = vmatpush3.xpose.msra.mxu0 %v5375_v45  ;;  %v2416_v48 = vsub.f32 %v5430_v23, %v6219_v27  ;;  %v2158_v44 = vsel %vm112_vm0, %v2075_v47, 0  ;;  %v2073_v40 = vmul.f32 %v3899_v37, %v6494_v36  ;;  %v6213_v47 = vand.u32 4294901760, %v5508_v8  ;;  %v6497_v24 = vld [vmem:[#allocation28_spill] sm:$0xff] }
 0x18d   :  { %3639 = vmatprep.subr.mxu0 %v5396_v15  ;;  %3669 = vmatprep.subr.mxu1 %v2403_v22  ;;  %v5528_v4 = vand.u32 4294901760, %v2158_v44  ;;  %v6214_v22 = vand.u32 4294901760, %v5500_v12  ;;  %v6212_v63 = vand.u32 4294901760, %v5518_v29  ;;  %v6216_v19 = vand.u32 4294901760, %v5532_v16 }
 0x18e   :  { %v2417_v53 = vand.u32 4294901760, %v2416_v48  ;;  %v2152_v6 = vsel %vm112_vm0, %v2073_v40, 0  ;;  %v2318_v11 = vsub.f32 %v5508_v8, %v6213_v47  ;;  %v5574_v37 = vand.u32 4294901760, %v2107_v50 }
 0x18f   :  { %3634 = vmatmul.mubr.msk.f32.vlgmr.msra.gmra.mxu1 %vm112_vm0, %v6295_v59  ;;  %6492 = vst [vmem:[#allocation25_spill] sm:$0xff] %v5528_v4  ;;  %v5560_v48 = vsub.f32 %v2158_v44, %v5528_v4  ;;  %v5577_v44 = vsub.f32 %v2155_v2, %v5543_v9  ;;  %v2437_v36 = vsub.f32 %v5518_v29, %v6212_v63  ;;  %v6501_v63 = vld [vmem:[#allocation30_spill] sm:$0xff] }
 0x190   :  { %3640 = vmatpush3.xpose.msra.mxu0 %v5410_v60  ;;  %3670 = vmatpush3.xpose.msra.mxu1 %v2291_v10  ;;  %v3900_v10 = vld [vmem:[%s6060_s1 + $0x38] sm:$0xff]  ;;  %6498 = vst [vmem:[#allocation27_spill] sm:$0xff] %v5574_v37  ;;  %v2325_v47 = vsub.f32 %v5532_v16, %v6216_v19  ;;  %v3904_v19 = vld [vmem:[%s6060_s1 + $0x28] sm:$0xff] }
 0x191   :  { %3641 = vmatprep.subr.mxu0 %v5426_v54  ;;  %3671 = vmatprep.subr.mxu1 %v2410_v14  ;;  %v2057_v28 = vmul.f32 %v3900_v10, %v6496_v31  ;;  %v2430_v14 = vsub.f32 %v5500_v12, %v6214_v22  ;;  %v3902_v10 = vld [vmem:[%s6060_s1 + $0x30] sm:$0xff]  ;;  %v6499_v31 = vld [vmem:[#allocation29_spill] sm:$0xff]  ;;  %v6223_v7 = vand.u32 4294901760, %v5577_v44 }
 0x192   :  { %3701 = vmatprep.mubr.msk.f32.mxu1 %vm112_vm0, %v6295_v59 }
 0x193   :  { %v2104_v40 = vsel %vm112_vm0, %v2057_v28, 0  ;;  %v2431_v2 = vand.u32 4294901760, %v2430_v14  ;;  %v5602_v14 = vsub.f32 %v2107_v50, %v5574_v37  ;;  %v3905_v50 = vld [vmem:[%s6060_s1 + $0xa0] sm:$0xff] }
 0x194   :  { %3642 = vmatpush3.xpose.msra.mxu0 %v5455_v46  ;;  %3672 = vmatpush3.xpose.msra.mxu1 %v2298_v62  ;;  %v5563_v62 = vsub.f32 %v2110_v5, %v5534_v18  ;;  %v2312_v5 = vand.u32 4294901760, %v2311_v57  ;;  %v3903_v57 = vld [vmem:[%s6060_s1 + $0xa8] sm:$0xff]  ;;  %v5604_v22 = vand.u32 4294901760, %v2104_v40 }
 0x195   :  { %3643 = vmatprep.subr.mxu0 %v5460_v32  ;;  %3673 = vmatprep.subr.mxu1 %v2417_v53  ;;  %v2072_v53 = vmul.f32 %v3901_v26, %v6497_v24  ;;  %v2056_v26 = vmul.f32 %v3902_v10, %v6499_v31  ;;  %v5589_v24 = vand.u32 4294901760, %v2152_v6  ;;  %v2071_v28 = vmul.f32 %v3903_v57, %v6501_v63 }
 0x196   :  { %v6221_v10 = vand.u32 4294901760, %v5563_v62  ;;  %6502 = vst [vmem:[#allocation31_spill] sm:$0xff] %v5604_v22  ;;  %v2438_v63 = vand.u32 4294901760, %v2437_v36 }
 0x197   :  { %6500 = vst [vmem:[#allocation43_spill] sm:$0xff] %v5589_v24  ;;  %v2149_v31 = vsel %vm112_vm0, %v2072_v53, 0  ;;  %v2101_v57 = vsel %vm112_vm0, %v2056_v26, 0  ;;  %v2055_v53 = vmul.f32 %v3904_v19, %v6503_v39  ;;  %v2146_v26 = vsel %vm112_vm0, %v2071_v28, 0 }
 0x198   :  { %3644 = vmatpush3.xpose.msra.mxu0 %v5475_v52  ;;  %3674 = vmatpush3.xpose.msra.mxu1 %v2305_v1  ;;  %v6220_v1 = vand.u32 4294901760, %v5560_v48  ;;  %v5621_v36 = vand.u32 4294901760, %v2149_v31  ;;  %v5625_v27 = vsub.f32 %v2152_v6, %v5589_v24  ;;  %v2326_v39 = vand.u32 4294901760, %v2325_v47 }
 0x199   :  { %3645 = vmatprep.subr.mxu0 %v5488_v43  ;;  %3675 = vmatprep.subr.mxu1 %v2424_v58  ;;  %v2319_v58 = vand.u32 4294901760, %v2318_v11  ;;  %v6504_v11 = vld [vmem:[#allocation34_spill] sm:$0xff]  ;;  %v2332_v19 = vsub.f32 %v5563_v62, %v6221_v10  ;;  %v5640_v6 = vand.u32 4294901760, %v2146_v26  ;;  %v2098_v47 = vsel %vm112_vm0, %v2055_v53, 0  ;;  %v6509_v10 = vld [vmem:[#allocation37_spill] sm:$0xff] }
 0x19a   :  { %v2070_v42 = vmul.f32 %v3905_v50, %v6504_v11  ;;  %6505 = vst [vmem:[#allocation32_spill] sm:$0xff] %v5621_v36  ;;  %v5631_v50 = vsub.f32 %v2104_v40, %v5604_v22  ;;  %v5636_v11 = vand.u32 4294901760, %v2101_v57  ;;  %v3906_v40 = vld [vmem:[%s6060_s1 + $0x20] sm:$0xff]  ;;  %v3907_v53 = vld [vmem:[%s6060_s1 + $0x98] sm:$0xff] }
 0x19b   :  { %6508 = vst [vmem:[#allocation36_spill] sm:$0xff] %v5640_v6  ;;  %v2054_v13 = vmul.f32 %v3906_v40, %v6509_v10  ;;  %v2333_v0 = vand.u32 4294901760, %v2332_v19  ;;  %v6513_v10 = vand.u32 4294901760, %v5602_v14  ;;  %v5671_v19 = vsub.f32 %v2146_v26, %v5640_v6  ;;  %v3909_v26 = vld [vmem:[%s6060_s1 + $0x90] sm:$0xff] }
 0x19c   :  { %3646 = vmatpush3.xpose.msra.mxu0 %v5502_v61  ;;  %3676 = vmatpush3.xpose.msra.mxu1 %v2312_v5  ;;  %v2444_v5 = vsub.f32 %v5560_v48, %v6220_v1  ;;  %6506 = vst [vmem:[#allocation35_spill] sm:$0xff] %v5631_v50  ;;  %6507 = vst [vmem:[#allocation51_spill] sm:$0xff] %v5636_v11  ;;  %v2143_v28 = vsel %vm112_vm0, %v2070_v42, 0  ;;  %v6511_v42 = vld [vmem:[#allocation38_spill] sm:$0xff]  ;;  %v5658_v1 = vsub.f32 %v2101_v57, %v5636_v11 }
 0x19d   :  { %3647 = vmatprep.subr.mxu0 %v5528_v4  ;;  %3677 = vmatprep.subr.mxu1 %v2431_v2  ;;  %v2451_v2 = vsub.f32 %v5577_v44, %v6223_v7  ;;  %v2069_v51 = vmul.f32 %v3907_v53, %v6511_v42  ;;  %v5665_v40 = vand.u32 4294901760, %v2143_v28  ;;  %v2095_v53 = vsel %vm112_vm0, %v2054_v13, 0  ;;  %6516 = vst [vmem:[#allocation55_spill] sm:$0xff] %v5671_v19 }
 0x19e   :  { %v2445_v7 = vand.u32 4294901760, %v2444_v5  ;;  %6512 = vst [vmem:[#allocation40_spill] sm:$0xff] %v5658_v1  ;;  %v5663_v5 = vand.u32 4294901760, %v2098_v47  ;;  %v6517_v57 = vand.u32 4294901760, %v5625_v27 }
 0x19f   :  { %6515 = vst [vmem:[#allocation45_spill] sm:$0xff] %v5665_v40 }
 0x1a0   :  { %3648 = vmatpush3.xpose.msra.mxu0 %v5534_v18  ;;  %3678 = vmatpush3.xpose.msra.mxu1 %v2319_v58  ;;  %v5651_v58 = vsub.f32 %v2149_v31, %v5621_v36  ;;  %6514 = vst [vmem:[#allocation44_spill] sm:$0xff] %v5663_v5  ;;  %v2452_v31 = vand.u32 4294901760, %v2451_v2  ;;  %v2458_v42 = vsub.f32 %v5625_v27, %v6517_v57  ;;  %v6518_v2 = vld [vmem:[#allocation42_spill] sm:$0xff]  ;;  %v5690_v57 = vand.u32 4294901760, %v2095_v53 }
 0x1a1   :  { %3649 = vmatprep.subr.mxu0 %v5543_v9  ;;  %3679 = vmatprep.subr.mxu1 %v2438_v63  ;;  %v2339_v63 = vsub.f32 %v5602_v14, %v6513_v10 }
 0x1a2   :  { %6510 = vst [vmem:[#allocation39_spill] sm:$0xff] %v5651_v58  ;;  %6521 = vst [vmem:[#allocation49_spill] sm:$0xff] %v5690_v57 }
 0x1a4   :  { %3650 = vmatpush3.xpose.msra.mxu0 %v5574_v37  ;;  %3680 = vmatpush3.xpose.msra.mxu1 %v2326_v39  ;;  %v2140_v37 = vsel %vm112_vm0, %v2069_v51, 0  ;;  %v3908_v39 = vld [vmem:[%s6060_s1 + $0x18] sm:$0xff]  ;;  %v5694_v51 = vsub.f32 %v2143_v28, %v5665_v40 }
 0x1a5   :  { %3651 = vmatprep.subr.mxu0 %v5589_v24  ;;  %3681 = vmatprep.subr.mxu1 %v2445_v7  ;;  %v2053_v13 = vmul.f32 %v3908_v39, %v6518_v2  ;;  %v2068_v7 = vmul.f32 %v3909_v26, %v6519_v25  ;;  %v5688_v24 = vsub.f32 %v2098_v47, %v5663_v5  ;;  %v2340_v39 = vand.u32 4294901760, %v2339_v63  ;;  %v6525_v63 = vld [vmem:[#allocation48_spill] sm:$0xff]  ;;  %v3911_v25 = vld [vmem:[%s6060_s1 + $0x88] sm:$0xff] }
 0x1a6   :  { %6522 = vst [vmem:[#allocation13_spill] sm:$0xff] %v5694_v51  ;;  %v6523_v2 = vand.u32 4294901760, %v5631_v50  ;;  %v5700_v18 = vand.u32 4294901760, %v2140_v37  ;;  %v2459_v47 = vand.u32 4294901760, %v2458_v42  ;;  %v6524_v26 = vand.u32 4294901760, %v5651_v58 }
 0x1a7   :  { %6520 = vst [vmem:[#allocation47_spill] sm:$0xff] %v5688_v24  ;;  %v2092_v10 = vsel %vm112_vm0, %v2053_v13, 0 }
 0x1a8   :  { %3652 = vmatpush3.xpose.msra.mxu0 %v5604_v22  ;;  %3682 = vmatpush3.xpose.msra.mxu1 %v2333_v0  ;;  %v2346_v9 = vsub.f32 %v5631_v50, %v6523_v2  ;;  %v2465_v28 = vsub.f32 %v5651_v58, %v6524_v26  ;;  %v3910_v0 = vld [vmem:[%s6060_s1 + $0x10] sm:$0xff]  ;;  %v2137_v22 = vsel %vm112_vm0, %v2068_v7, 0  ;;  %v6527_v26 = vand.u32 4294901760, %v5658_v1 }
 0x1a9   :  { %3653 = vmatprep.subr.mxu0 %v5621_v36  ;;  %3683 = vmatprep.subr.mxu1 %v2452_v31  ;;  %v2052_v2 = vmul.f32 %v3910_v0, %v6525_v63  ;;  %v6526_v31 = vld [vmem:[#allocation52_spill] sm:$0xff]  ;;  %v5718_v36 = vsub.f32 %v2095_v53, %v5690_v57  ;;  %v6528_v0 = vand.u32 4294901760, %v5671_v19  ;;  %v5732_v53 = vsub.f32 %v2140_v37, %v5700_v18  ;;  %v3913_v37 = vld [vmem:[%s6060_s1 + $0x80] sm:$0xff] }
 0x1aa   :  { %v2067_v42 = vmul.f32 %v3911_v25, %v6526_v31  ;;  %v2353_v13 = vsub.f32 %v5658_v1, %v6527_v26  ;;  %v2347_v7 = vand.u32 4294901760, %v2346_v9  ;;  %v5729_v25 = vand.u32 4294901760, %v2092_v10  ;;  %v3912_v9 = vld [vmem:[%s6060_s1 + $0x8] sm:$0xff] }
 0x1ab   :  { %v2472_v63 = vsub.f32 %v5671_v19, %v6528_v0  ;;  %v2466_v31 = vand.u32 4294901760, %v2465_v28  ;;  %v5735_v26 = vand.u32 4294901760, %v2137_v22  ;;  %v2089_v50 = vsel %vm112_vm0, %v2052_v2, 0 }
 0x1ac   :  { %3654 = vmatpush3.xpose.msra.mxu0 %v5636_v11  ;;  %3684 = vmatpush3.xpose.msra.mxu1 %v2340_v39  ;;  %v6530_v39 = vld [vmem:[#allocation53_spill] sm:$0xff]  ;;  %v2134_v0 = vsel %vm112_vm0, %v2067_v42, 0  ;;  %v6531_v11 = vld [vmem:[#allocation54_spill] sm:$0xff]  ;;  %v6532_v28 = vand.u32 4294901760, %v5688_v24  ;;  %v6533_v2 = vand.u32 4294901760, %v5694_v51 }
 0x1ad   :  { %3655 = vmatprep.subr.mxu0 %v5640_v6  ;;  %3685 = vmatprep.subr.mxu1 %v2459_v47  ;;  %6529 = vst [vmem:[#allocation6_spill] sm:$0xff] %v5735_v26  ;;  %v2051_v58 = vmul.f32 %v3912_v9, %v6530_v39  ;;  %v2066_v6 = vmul.f32 %v3913_v37, %v6531_v11  ;;  %v2354_v47 = vand.u32 4294901760, %v2353_v13  ;;  %v2473_v42 = vand.u32 4294901760, %v2472_v63 }
 0x1ae   :  { %v2360_v19 = vsub.f32 %v5688_v24, %v6532_v28  ;;  %v2479_v1 = vsub.f32 %v5694_v51, %v6533_v2  ;;  %v5756_v9 = vsub.f32 %v2092_v10, %v5729_v25  ;;  %v5758_v39 = vand.u32 4294901760, %v2089_v50  ;;  %v6534_v10 = vld [vmem:[#allocation58_spill] sm:$0xff] }
 0x1af   :  { %v5762_v13 = vand.u32 4294901760, %v2134_v0  ;;  %v2086_v37 = vsel %vm112_vm0, %v2051_v58, 0  ;;  %v5766_v28 = vsub.f32 %v2137_v22, %v5735_v26  ;;  %v2131_v2 = vsel %vm112_vm0, %v2066_v6, 0 }
 0x1b0   :  { %3656 = vmatpush3.xpose.msra.mxu0 %v5663_v5  ;;  %3686 = vmatpush3.xpose.msra.mxu1 %v2347_v7  ;;  %v3914_v7 = vld [vmem:[%s6060_s1] sm:$0xff]  ;;  %v2361_v4 = vand.u32 4294901760, %v2360_v19  ;;  %v2480_v11 = vand.u32 4294901760, %v2479_v1  ;;  %v5778_v22 = vsub.f32 %v2089_v50, %v5758_v39  ;;  %v6536_v58 = vand.u32 4294901760, %v5732_v53 }
 0x1b1   :  { %3657 = vmatprep.subr.mxu0 %v5665_v40  ;;  %3687 = vmatprep.subr.mxu1 %v2466_v31  ;;  %v2050_v63 = vmul.f32 %v3914_v7, %v6534_v10  ;;  %v6535_v40 = vand.u32 4294901760, %v5718_v36  ;;  %v5783_v51 = vand.u32 4294901760, %v2086_v37  ;;  %v6259_v6 = vand.u32 4294901760, %v5756_v9 }
 0x1b2   :  { %v2486_v5 = vsub.f32 %v5732_v53, %v6536_v58  ;;  %v5787_v1 = vand.u32 4294901760, %v2131_v2  ;;  %v5792_v50 = vsub.f32 %v2134_v0, %v5762_v13  ;;  %v6261_v58 = vand.u32 4294901760, %v5778_v22 }
 0x1b3   :  { %v2367_v31 = vsub.f32 %v5718_v36, %v6535_v40  ;;  %v6260_v40 = vand.u32 4294901760, %v5766_v28  ;;  %v2083_v19 = vsel %vm112_vm0, %v2050_v63, 0  ;;  %v5796_v7 = vsub.f32 %v2086_v37, %v5783_v51 }
 0x1b4   :  { %3658 = vmatpush3.xpose.msra.mxu0 %v5690_v57  ;;  %3688 = vmatpush3.xpose.msra.mxu1 %v2354_v47  ;;  %v5801_v10 = vand.u32 4294901760, %v2083_v19  ;;  %v2487_v0 = vand.u32 4294901760, %v2486_v5  ;;  %v5810_v37 = vsub.f32 %v2131_v2, %v5787_v1  ;;  %v2381_v5 = vsub.f32 %v5778_v22, %v6261_v58 }
 0x1b5   :  { %3659 = vmatprep.subr.mxu0 %v5700_v18  ;;  %3689 = vmatprep.subr.mxu1 %v2473_v42  ;;  %v2368_v47 = vand.u32 4294901760, %v2367_v31  ;;  %6537 = vst [vmem:[#allocation56_spill] sm:$0xff] %v5796_v7  ;;  %v2374_v42 = vsub.f32 %v5756_v9, %v6259_v6  ;;  %v2493_v63 = vsub.f32 %v5766_v28, %v6260_v40 }
 0x1b6   :  { %v5814_v6 = vsub.f32 %v2083_v19, %v5801_v10  ;;  %v2382_v19 = vand.u32 4294901760, %v2381_v5 }
 0x1b7   :  { %v2375_v31 = vand.u32 4294901760, %v2374_v42  ;;  %v2494_v40 = vand.u32 4294901760, %v2493_v63 }
 0x1b8   :  { %3660 = vmatpush3.xpose.msra.mxu0 %v5729_v25  ;;  %3690 = vmatpush3.xpose.msra.mxu1 %v2361_v4  ;;  %v6262_v4 = vand.u32 4294901760, %v5792_v50  ;;  %v6263_v58 = vand.u32 4294901760, %v5814_v6 }
 0x1b9   :  { %3661 = vmatprep.subr.mxu0 %v5735_v26  ;;  %3691 = vmatprep.subr.mxu1 %v2480_v11  ;;  %v6265_v11 = vand.u32 4294901760, %v5796_v7 }
 0x1ba   :  { %v2500_v2 = vsub.f32 %v5792_v50, %v6262_v4 }
 0x1bb   :  { %v2388_v42 = vsub.f32 %v5796_v7, %v6265_v11  ;;  %v6550_v11 = vld [vmem:[#allocation51_spill] sm:$0xff] }
 0x1bc   :  { %3662 = vmatpush3.xpose.msra.mxu0 %v5758_v39  ;;  %3692 = vmatpush3.xpose.msra.mxu1 %v2368_v47  ;;  %v6264_v47 = vand.u32 4294901760, %v5810_v37 }
 0x1bd   :  { %3663 = vmatprep.subr.mxu0 %v5762_v13  ;;  %3693 = vmatprep.subr.mxu1 %v2487_v0  ;;  %v2501_v0 = vand.u32 4294901760, %v2500_v2  ;;  %v2389_v4 = vand.u32 4294901760, %v2388_v42  ;;  %v6540_v2 = vld [vmem:[#allocation26_spill] sm:$0xff]  ;;  %v6542_v42 = vld [vmem:[#allocation41_spill] sm:$0xff] }
 0x1be   :  { %v2507_v63 = vsub.f32 %v5810_v37, %v6264_v47  ;;  %v6549_v47 = vld [vmem:[#allocation32_spill] sm:$0xff] }
 0x1c0   :  { %3664 = vmatpush3.xpose.msra.mxu0 %v5783_v51  ;;  %3694 = vmatpush3.xpose.msra.mxu1 %v2375_v31  ;;  %v2395_v31 = vsub.f32 %v5814_v6, %v6263_v58  ;;  %v2508_v5 = vand.u32 4294901760, %v2507_v63  ;;  %v6544_v63 = vld [vmem:[#allocation27_spill] sm:$0xff]  ;;  %v6548_v58 = vld [vmem:[#allocation13_spill] sm:$0xff] }
 0x1c1   :  { %3665 = vmatprep.subr.mxu0 %v5787_v1  ;;  %3695 = vmatprep.subr.mxu1 %v2494_v40 }
 0x1c2   :  { %v2396_v40 = vand.u32 4294901760, %v2395_v31  ;;  %v6545_v31 = vld [vmem:[#allocation55_spill] sm:$0xff] }
 0x1c4   :  { %3666 = vmatpush3.xpose.msra.mxu0 %v5801_v10  ;;  %3696 = vmatpush3.xpose.msra.mxu1 %v2382_v19  ;;  %v6541_v19 = vld [vmem:[#allocation39_spill] sm:$0xff] }
 0x1c5   :  { %3697 = vmatprep.subr.mxu1 %v2501_v0  ;;  %3703 = vmatprep.subr.mxu0 %v5366_v56  ;;  %v6543_v0 = vld [vmem:[#allocation40_spill] sm:$0xff] }
 0x1c7   :  { %3668 = vmatmul.mubr.f32.vlgmr.msra.gmra.mxu0 %v6488_v3  ;;  %v6538_v3 = vld [vmem:[#allocation25_spill] sm:$0xff] }
 0x1c8   :  { %3698 = vmatpush3.xpose.msra.mxu1 %v2389_v4  ;;  %3704 = vmatpush3.xpose.msra.mxu0 %v5383_v30  ;;  %v6539_v4 = vld [vmem:[#allocation35_spill] sm:$0xff] }
 0x1c9   :  { %3699 = vmatprep.subr.mxu1 %v2508_v5  ;;  %3705 = vmatprep.subr.mxu0 %v5391_v21  ;;  %v6546_v5 = vld [vmem:[#allocation43_spill] sm:$0xff] }
 0x1ca   :  { %3735 = vmatprep.mubr.f32.mxu0 %v4265_v35 }
 0x1cc   :  { %3700 = vmatpush3.xpose.msra.mxu1 %v2396_v40  ;;  %3706 = vmatpush3.xpose.msra.mxu0 %v5403_v33  ;;  %v6547_v40 = vld [vmem:[#allocation31_spill] sm:$0xff] }
 0x1cd   :  { %3707 = vmatprep.subr.mxu0 %v5430_v23  ;;  %3737 = vmatprep.subr.mxu1 %v5346_v55 }
 0x1cf   :  { %3702 = vmatmul.mubr.msk.f32.vlgmr.msra.gmra.mxu1 %vm112_vm0, %v6295_v59 }
 0x1d0   :  { %3708 = vmatpush3.xpose.msra.mxu0 %v5441_v17  ;;  %3738 = vmatpush3.xpose.msra.mxu1 %v5357_v41 }
 0x1d1   :  { %3709 = vmatprep.subr.mxu0 %v5465_v20  ;;  %3739 = vmatprep.subr.mxu1 %v5363_v34 }
 0x1d2   :  { %3769 = vmatprep.mubr.f32.mxu1 %v4304_v49 }
 0x1d4   :  { %3710 = vmatpush3.xpose.msra.mxu0 %v5486_v38  ;;  %3740 = vmatpush3.xpose.msra.mxu1 %v5375_v45 }
 0x1d5   :  { %3711 = vmatprep.subr.mxu0 %v5500_v12  ;;  %3741 = vmatprep.subr.mxu1 %v5396_v15 }
 0x1d8   :  { %3712 = vmatpush3.xpose.msra.mxu0 %v5508_v8  ;;  %3742 = vmatpush3.xpose.msra.mxu1 %v5410_v60 }
 0x1d9   :  { %3713 = vmatprep.subr.mxu0 %v5518_v29  ;;  %3743 = vmatprep.subr.mxu1 %v5426_v54 }
 0x1dc   :  { %3714 = vmatpush3.xpose.msra.mxu0 %v5532_v16  ;;  %3744 = vmatpush3.xpose.msra.mxu1 %v5455_v46 }
 0x1dd   :  { %3715 = vmatprep.subr.mxu0 %v5560_v48  ;;  %3745 = vmatprep.subr.mxu1 %v5460_v32 }
 0x1e0   :  { %3716 = vmatpush3.xpose.msra.mxu0 %v5563_v62  ;;  %3746 = vmatpush3.xpose.msra.mxu1 %v5475_v52 }
 0x1e1   :  { %3717 = vmatprep.subr.mxu0 %v5577_v44  ;;  %3747 = vmatprep.subr.mxu1 %v5488_v43 }
 0x1e4   :  { %3718 = vmatpush3.xpose.msra.mxu0 %v5602_v14  ;;  %3748 = vmatpush3.xpose.msra.mxu1 %v5502_v61 }
 0x1e5   :  { %3719 = vmatprep.subr.mxu0 %v5625_v27  ;;  %3749 = vmatprep.subr.mxu1 %v6538_v3 }
 0x1e8   :  { %3720 = vmatpush3.xpose.msra.mxu0 %v6539_v4  ;;  %3750 = vmatpush3.xpose.msra.mxu1 %v6540_v2 }
 0x1e9   :  { %3721 = vmatprep.subr.mxu0 %v6541_v19  ;;  %3751 = vmatprep.subr.mxu1 %v6542_v42 }
 0x1ec   :  { %3722 = vmatpush3.xpose.msra.mxu0 %v6543_v0  ;;  %3752 = vmatpush3.xpose.msra.mxu1 %v6544_v63  ;;  %v6551_v0 = vld [vmem:[#allocation36_spill] sm:$0xff] }
 0x1ed   :  { %3723 = vmatprep.subr.mxu0 %v6545_v31  ;;  %3753 = vmatprep.subr.mxu1 %v6546_v5  ;;  %v6552_v31 = vld [vmem:[#allocation44_spill] sm:$0xff] }
 0x1f0   :  { %3724 = vmatpush3.xpose.msra.mxu0 %v5688_v24  ;;  %3754 = vmatpush3.xpose.msra.mxu1 %v6547_v40  ;;  %v6553_v24 = vld [vmem:[#allocation45_spill] sm:$0xff] }
 0x1f1   :  { %3725 = vmatprep.subr.mxu0 %v6548_v58  ;;  %3755 = vmatprep.subr.mxu1 %v6549_v47 }
 0x1f4   :  { %3726 = vmatpush3.xpose.msra.mxu0 %v5718_v36  ;;  %3756 = vmatpush3.xpose.msra.mxu1 %v6550_v11 }
 0x1f5   :  { %3727 = vmatprep.subr.mxu0 %v5732_v53  ;;  %3757 = vmatprep.subr.mxu1 %v6551_v0 }
 0x1f8   :  { %3728 = vmatpush3.xpose.msra.mxu0 %v5756_v9  ;;  %3758 = vmatpush3.xpose.msra.mxu1 %v6552_v31 }
 0x1f9   :  { %3729 = vmatprep.subr.mxu0 %v5766_v28  ;;  %3759 = vmatprep.subr.mxu1 %v6553_v24 }
 0x1fc   :  { %3730 = vmatpush3.xpose.msra.mxu0 %v5778_v22  ;;  %3760 = vmatpush3.xpose.msra.mxu1 %v5690_v57  ;;  %v6554_v57 = vand.u32 4294901760, %v5366_v56  ;;  %v6557_v56 = vand.u32 4294901760, %v5403_v33  ;;  %v6561_v33 = vand.u32 4294901760, %v5486_v38  ;;  %v6577_v38 = vld [vmem:[#allocation47_spill] sm:$0xff] }
 0x1fd   :  { %3731 = vmatprep.subr.mxu0 %v5792_v50  ;;  %3761 = vmatprep.subr.mxu1 %v5700_v18 }
 0x200   :  { %3732 = vmatpush3.xpose.msra.mxu0 %v5796_v7  ;;  %3762 = vmatpush3.xpose.msra.mxu1 %v5729_v25  ;;  %v6555_v7 = vand.u32 4294901760, %v5383_v30  ;;  %v6559_v30 = vand.u32 4294901760, %v5441_v17  ;;  %v6571_v17 = vand.u32 4294901760, %v6539_v4 }
 0x201   :  { %3733 = vmatprep.subr.mxu0 %v5810_v37  ;;  %3763 = vmatprep.subr.mxu1 %v5735_v26  ;;  %v6556_v26 = vand.u32 4294901760, %v5391_v21  ;;  %v6560_v21 = vand.u32 4294901760, %v5465_v20 }
 0x204   :  { %3734 = vmatpush3.xpose.msra.mxu0 %v5814_v6  ;;  %3764 = vmatpush3.xpose.msra.mxu1 %v5758_v39 }
 0x205   :  { %3765 = vmatprep.subr.mxu1 %v5762_v13  ;;  %3771 = vmatprep.subr.mxu0 %v6554_v57  ;;  %v6589_v57 = vand.u32 4294901760, %v5810_v37 }
 0x207   :  { %3736 = vmatmul.mubr.f32.vlgmr.msra.gmra.mxu0 %v4265_v35  ;;  %v6558_v35 = vand.u32 4294901760, %v5430_v23  ;;  %v6570_v23 = vand.u32 4294901760, %v5625_v27 }
 0x208   :  { %3766 = vmatpush3.xpose.msra.mxu1 %v5783_v51  ;;  %3772 = vmatpush3.xpose.msra.mxu0 %v6555_v7 }
 0x209   :  { %3767 = vmatprep.subr.mxu1 %v5787_v1  ;;  %3773 = vmatprep.subr.mxu0 %v6556_v26 }
 0x20a   :  { %3803 = vmatprep.mubr.msk.f32.mxu0 %vm112_vm0, %v6295_v59 }
 0x20c   :  { %3768 = vmatpush3.xpose.msra.mxu1 %v5801_v10  ;;  %3774 = vmatpush3.xpose.msra.mxu0 %v6557_v56 }
 0x20d   :  { %3775 = vmatprep.subr.mxu0 %v6558_v35  ;;  %3805 = vmatprep.subr.mxu1 %v5346_v55  ;;  %v6563_v55 = vand.u32 4294901760, %v5508_v8  ;;  %v6581_v8 = vand.u32 4294901760, %v5732_v53  ;;  %v6590_v53 = vld [vmem:[#allocation6_spill] sm:$0xff] }
 0x20f   :  { %3770 = vmatmul.mubr.f32.vlgmr.msra.gmra.mxu1 %v4304_v49  ;;  %v6562_v49 = vand.u32 4294901760, %v5500_v12  ;;  %v6579_v12 = vand.u32 4294901760, %v6548_v58 }
 0x210   :  { %3776 = vmatpush3.xpose.msra.mxu0 %v6559_v30  ;;  %3806 = vmatpush3.xpose.msra.mxu1 %v5357_v41  ;;  %v6564_v41 = vand.u32 4294901760, %v5518_v29  ;;  %v6582_v29 = vand.u32 4294901760, %v5756_v9 }
 0x211   :  { %3777 = vmatprep.subr.mxu0 %v6560_v21  ;;  %3807 = vmatprep.subr.mxu1 %v5363_v34  ;;  %v6565_v34 = vand.u32 4294901760, %v5532_v16  ;;  %v6583_v16 = vand.u32 4294901760, %v5766_v28 }
 0x212   :  { %3837 = vmatprep.mubr.msk.f32.mxu1 %vm112_vm0, %v6295_v59 }
 0x214   :  { %3778 = vmatpush3.xpose.msra.mxu0 %v6561_v33  ;;  %3808 = vmatpush3.xpose.msra.mxu1 %v5375_v45  ;;  %v6566_v45 = vand.u32 4294901760, %v5560_v48  ;;  %v6584_v48 = vand.u32 4294901760, %v5778_v22 }
 0x215   :  { %3779 = vmatprep.subr.mxu0 %v6562_v49  ;;  %3809 = vmatprep.subr.mxu1 %v5396_v15  ;;  %v6567_v15 = vand.u32 4294901760, %v5563_v62  ;;  %v6585_v62 = vld [vmem:[#allocation49_spill] sm:$0xff] }
 0x218   :  { %3780 = vmatpush3.xpose.msra.mxu0 %v6563_v55  ;;  %3810 = vmatpush3.xpose.msra.mxu1 %v5410_v60  ;;  %v6568_v60 = vand.u32 4294901760, %v5577_v44  ;;  %v6586_v44 = vand.u32 4294901760, %v5792_v50 }
 0x219   :  { %3781 = vmatprep.subr.mxu0 %v6564_v41  ;;  %3811 = vmatprep.subr.mxu1 %v5426_v54  ;;  %v6569_v54 = vand.u32 4294901760, %v5602_v14  ;;  %v6587_v14 = vld [vmem:[#allocation56_spill] sm:$0xff] }
 0x21c   :  { %3782 = vmatpush3.xpose.msra.mxu0 %v6565_v34  ;;  %3812 = vmatpush3.xpose.msra.mxu1 %v5455_v46  ;;  %v6572_v46 = vand.u32 4294901760, %v6541_v19 }
 0x21d   :  { %3783 = vmatprep.subr.mxu0 %v6566_v45  ;;  %3813 = vmatprep.subr.mxu1 %v5460_v32  ;;  %v6573_v32 = vld [vmem:[#allocation40_spill] sm:$0xff] }
 0x21e   :  { %v6574_v20 = vand.u32 4294901760, %v6573_v32 }
 0x220   :  { %3784 = vmatpush3.xpose.msra.mxu0 %v6567_v15  ;;  %3814 = vmatpush3.xpose.msra.mxu1 %v5475_v52  ;;  %v6575_v52 = vld [vmem:[#allocation55_spill] sm:$0xff] }
 0x221   :  { %3785 = vmatprep.subr.mxu0 %v6568_v60  ;;  %3815 = vmatprep.subr.mxu1 %v5488_v43  ;;  %v6576_v27 = vand.u32 4294901760, %v6575_v52  ;;  %v6578_v43 = vand.u32 4294901760, %v6577_v38 }
 0x224   :  { %3786 = vmatpush3.xpose.msra.mxu0 %v6569_v54  ;;  %3816 = vmatpush3.xpose.msra.mxu1 %v5502_v61  ;;  %v6580_v61 = vand.u32 4294901760, %v5718_v36  ;;  %v6588_v36 = vand.u32 4294901760, %v6587_v14 }
 0x225   :  { %3787 = vmatprep.subr.mxu0 %v6570_v23  ;;  %3817 = vmatprep.subr.mxu1 %v6538_v3 }
 0x228   :  { %3788 = vmatpush3.xpose.msra.mxu0 %v6571_v17  ;;  %3818 = vmatpush3.xpose.msra.mxu1 %v6540_v2 }
 0x229   :  { %3789 = vmatprep.subr.mxu0 %v6572_v46  ;;  %3819 = vmatprep.subr.mxu1 %v6542_v42 }
 0x22c   :  { %3790 = vmatpush3.xpose.msra.mxu0 %v6574_v20  ;;  %3820 = vmatpush3.xpose.msra.mxu1 %v6544_v63 }
 0x22d   :  { %3791 = vmatprep.subr.mxu0 %v6576_v27  ;;  %3821 = vmatprep.subr.mxu1 %v6546_v5 }
 0x230   :  { %3792 = vmatpush3.xpose.msra.mxu0 %v6578_v43  ;;  %3822 = vmatpush3.xpose.msra.mxu1 %v6547_v40 }
 0x231   :  { %3793 = vmatprep.subr.mxu0 %v6579_v12  ;;  %3823 = vmatprep.subr.mxu1 %v6549_v47 }
 0x234   :  { %3794 = vmatpush3.xpose.msra.mxu0 %v6580_v61  ;;  %3824 = vmatpush3.xpose.msra.mxu1 %v6550_v11 }
 0x235   :  { %3795 = vmatprep.subr.mxu0 %v6581_v8  ;;  %3825 = vmatprep.subr.mxu1 %v6551_v0 }
 0x238   :  { %3796 = vmatpush3.xpose.msra.mxu0 %v6582_v29  ;;  %3826 = vmatpush3.xpose.msra.mxu1 %v6552_v31 }
 0x239   :  { %3797 = vmatprep.subr.mxu0 %v6583_v16  ;;  %3827 = vmatprep.subr.mxu1 %v6553_v24  ;;  %v6591_v24 = vand.u32 4294901760, %v5814_v6 }
 0x23c   :  { %3798 = vmatpush3.xpose.msra.mxu0 %v6584_v48  ;;  %3828 = vmatpush3.xpose.msra.mxu1 %v6585_v62 }
 0x23d   :  { %3799 = vmatprep.subr.mxu0 %v6586_v44  ;;  %3829 = vmatprep.subr.mxu1 %v5700_v18  ;;  %v315_v18 = vpop.f32.mrf.mxu0 }
 0x23f   :  { %v317_v26 = vpop.f32.mrf.mxu0 }
 0x240   :  { %3800 = vmatpush3.xpose.msra.mxu0 %v6588_v36  ;;  %3830 = vmatpush3.xpose.msra.mxu1 %v5729_v25  ;;  %v547_v25 = vpop.f32.mrf.mxu1 }
 0x241   :  { %3801 = vmatprep.subr.mxu0 %v6589_v57  ;;  %3831 = vmatprep.subr.mxu1 %v6590_v53  ;;  %v684_v28 = vpop.f32.mrf.mxu0  ;;  %v548_v4 = vadd.f32 %v547_v25, %v315_v18 }
 0x242   :  { %v549_v9 = vpop.f32.mrf.mxu1 }
 0x243   :  { %v686_v22 = vpop.f32.mrf.mxu0  ;;  %v685_v0 = vadd.f32 %v684_v28, %v548_v4  ;;  %v550_v31 = vadd.f32 %v549_v9, %v317_v26 }
 0x244   :  { %3802 = vmatpush3.xpose.msra.mxu0 %v6591_v24  ;;  %3832 = vmatpush3.xpose.msra.mxu1 %v5758_v39  ;;  %v790_v39 = vpop.f32.mrf.mxu1 }
 0x245   :  { %3833 = vmatprep.subr.mxu1 %v5762_v13  ;;  %v958_v6 = vpop.f32.mrf.mxu0  ;;  %v791_v56 = vadd.f32 %v790_v39, %v685_v0  ;;  %v687_v30 = vadd.f32 %v686_v22, %v550_v31 }
 0x246   :  { %v792_v13 = vpop.f32.mrf.mxu1 }
 0x247   :  { %3804 = vmatmul.mubr.msk.f32.vlgmr.msra.gmra.mxu0 %vm112_vm0, %v6295_v59  ;;  %v960_v7 = vpop.f32.mrf.mxu0  ;;  %v959_v49 = vadd.f32 %v958_v6, %v791_v56  ;;  %v793_v41 = vadd.f32 %v792_v13, %v687_v30 }
 0x248   :  { %3834 = vmatpush3.xpose.msra.mxu1 %v5783_v51  ;;  %v1062_v50 = vpop.f32.mrf.mxu1 }
 0x249   :  { %3835 = vmatprep.subr.mxu1 %v5787_v1  ;;  %v1298_v51 = vpop.f32.mrf.mxu0  ;;  %v6015_v15 = vadd.f32 %v1062_v50, %v959_v49  ;;  %v961_v54 = vadd.f32 %v960_v7, %v793_v41 }
 0x24a   :  { %v1064_v58 = vpop.f32.mrf.mxu1 }
 0x24b   :  { %v1300_v1 = vpop.f32.mrf.mxu0  ;;  %v6019_v17 = vadd.f32 %v1064_v58, %v961_v54  ;;  %v3033_v32 = vsub.f32 0.0, %v6015_v15  ;;  %v3053_v20 = vadd.f32 1e-08, %v6015_v15 }
 0x24c   :  { %3836 = vmatpush3.xpose.msra.mxu1 %v5801_v10  ;;  %v1530_v37 = vpop.f32.mrf.mxu1 }
 0x24d   :  { %v1667_v10 = vpop.f32.mrf.mxu0  ;;  %v1531_v3 = vadd.f32 %v1530_v37, %v1298_v51  ;;  %v3034_v27 = vsub.f32 0.0, %v6019_v17  ;;  %v3035_v43 = vmul.f32 1.442695, %v3033_v32  ;;  %3843 = vrsqrt.f32 %v3053_v20 }
 0x24e   :  { %v1532_v11 = vpop.f32.mrf.mxu1  ;;  %v3054_v16 = vadd.f32 1e-08, %v6019_v17  ;;  %vm3057_vm2 = vcmp.eq.f32.partialorder %v3053_v20, inf  ;;  %v3060_v7 = vand.u32 2147483648, %v3053_v20  ;;  %vm3059_vm6 = vcmp.eq.f32.partialorder %v3053_v20, 0.0 }
 0x24f   :  { %3838 = vmatmul.mubr.msk.f32.vlgmr.msra.gmra.mxu1 %vm112_vm0, %v6295_v59  ;;  %v1669_v59 = vpop.f32.mrf.mxu0  ;;  %v1668_v2 = vadd.f32 %v1667_v10, %v1531_v3  ;;  %v1533_v63 = vadd.f32 %v1532_v11, %v1300_v1  ;;  %v3037_v8 = vmul.f32 1.442695, %v3034_v27 }
 0x250   :  { %v1773_v47 = vpop.f32.mrf.mxu1  ;;  %vm3064_vm5 = vcmp.eq.f32.partialorder %v3054_v16, inf  ;;  %vm3066_vm8 = vcmp.eq.f32.partialorder %v3054_v16, 0.0 }
 0x251   :  { %v1941_v42 = vpop.f32.mrf.mxu0  ;;  %v1774_v5 = vadd.f32 %v1773_v47, %v1668_v2  ;;  %v1670_v35 = vadd.f32 %v1669_v59, %v1533_v63 }
 0x252   :  { %v1775_v19 = vpop.f32.mrf.mxu1 }
 0x253   :  { %v1942_v21 = vadd.f32 %v1941_v42, %v1774_v5  ;;  %v1943_v33 = vpop.f32.mrf.mxu0  ;;  %v1776_v55 = vadd.f32 %v1775_v19, %v1670_v35  ;;  %v3067_v19 = vand.u32 2147483648, %v3054_v16 }
 0x254   :  { %v2045_v40 = vpop.f32.mrf.mxu1 }
 0x255   :  { %v6013_v34 = vadd.f32 %v2045_v40, %v1942_v21  ;;  %v1944_v60 = vadd.f32 %v1943_v33, %v1776_v55 }
 0x256   :  { %v2047_v45 = vpop.f32.mrf.mxu1 }
 0x257   :  { %v6017_v23 = vadd.f32 %v2047_v45, %v1944_v60  ;;  %v3043_v46 = vsub.f32 0.0, %v6013_v34  ;;  %v3075_v12 = vadd.f32 1e-08, %v6013_v34  ;;  %v3141_v45 = vadd.f32 %v6013_v34, %v6015_v15 }
 0x259   :  { %v3044_v52 = vsub.f32 0.0, %v6017_v23  ;;  %v3045_v38 = vmul.f32 1.442695, %v3043_v46  ;;  %v3076_v29 = vadd.f32 1e-08, %v6017_v23  ;;  %vm3079_vm1 = vcmp.eq.f32.partialorder %v3075_v12, inf }
 0x25a   :  { %v3844_v48 = vpop.eup %3843  ;;  %v3082_v1 = vand.u32 2147483648, %v3075_v12  ;;  %vm3081_vm4 = vcmp.eq.f32.partialorder %v3075_v12, 0.0 }
 0x25b   :  { %v3047_v61 = vmul.f32 1.442695, %v3044_v52  ;;  %3845 = vpow2.f32 %v3045_v38  ;;  %v3056_v28 = vmul.f32 %v3844_v48, %v3053_v20  ;;  %vm3086_vm3 = vcmp.eq.f32.partialorder %v3076_v29, inf }
 0x25c   :  { %3847 = vpow2.f32 %v3035_v43  ;;  %v3089_v4 = vand.u32 2147483648, %v3076_v29  ;;  %vm3088_vm7 = vcmp.eq.f32.partialorder %v3076_v29, 0.0 }
 0x25d   :  { %3849 = vrsqrt.f32 %v3075_v12  ;;  %v3058_v37 = vsel %vm3057_vm2, %v3053_v20, %v3056_v28  ;;  %v3142_v20 = vadd.f32 %v6017_v23, %v6019_v17 }
 0x25e   :  { %3851 = vpow2.f32 %v3047_v61  ;;  %v3061_v2 = vsel %vm3059_vm6, %v3060_v7, %v3058_v37  ;;  %v3143_v61 = vmul.f32 1.442695, %v3141_v45 }
 0x25f   :  { %3853 = vpow2.f32 %v3037_v8  ;;  %v3069_v5 = vadd.f32 1e-08, %v3061_v2 }
 0x260   :  { %3855 = vrsqrt.f32 %v3076_v29 }
 0x261   :  { %3857 = vrsqrt.f32 %v3054_v16 }
 0x268   :  { %v3846_v62 = vpop.eup %3845 }
 0x269   :  { %v3848_v44 = vpop.eup %3847  ;;  %v3049_v57 = vsub.f32 1.0, %v3846_v62 }
 0x26a   :  { %v3850_v14 = vpop.eup %3849  ;;  %v3039_v18 = vsub.f32 1.0, %v3848_v44 }
 0x26b   :  { %v3852_v36 = vpop.eup %3851  ;;  %v3078_v26 = vmul.f32 %v3850_v14, %v3075_v12  ;;  %v6029_v39 = vadd.f32 1e-08, %v3049_v57 }
 0x26c   :  { %v3854_v53 = vpop.eup %3853  ;;  %v3050_v9 = vsub.f32 1.0, %v3852_v36  ;;  %v6031_v50 = vadd.f32 1e-08, %v3039_v18  ;;  %v3145_v36 = vmul.f32 1.442695, %v3142_v20 }
 0x26d   :  { %v3856_v24 = vpop.eup %3855  ;;  %v3040_v13 = vsub.f32 1.0, %v3854_v53  ;;  %v3080_v58 = vsel %vm3079_vm1, %v3075_v12, %v3078_v26 }
 0x26e   :  { %v3858_v25 = vpop.eup %3857  ;;  %v3085_v22 = vmul.f32 %v3856_v24, %v3076_v29  ;;  %v6033_v51 = vadd.f32 1e-08, %v3050_v9  ;;  %v3111_v11 = vmul.f32 %v6029_v39, %v6031_v50  ;;  %v3083_v3 = vsel %vm3081_vm4, %v3082_v1, %v3080_v58 }
 0x26f   :  { %v3063_v6 = vmul.f32 %v3858_v25, %v3054_v16  ;;  %v6037_v10 = vadd.f32 1e-08, %v3040_v13  ;;  %v3091_v63 = vadd.f32 1e-08, %v3083_v3 }
 0x270   :  { %v3087_v47 = vsel %vm3086_vm3, %v3076_v29, %v3085_v22  ;;  %3859 = vrsqrt.f32 %v3111_v11  ;;  %vm3115_vm9 = vcmp.eq.f32.partialorder %v3111_v11, inf  ;;  %v3118_v12 = vand.u32 2147483648, %v3111_v11 }
 0x271   :  { %v3065_v59 = vsel %vm3064_vm5, %v3054_v16, %v3063_v6  ;;  %v3112_v42 = vmul.f32 %v6033_v51, %v6037_v10  ;;  %v3090_v0 = vsel %vm3088_vm7, %v3089_v4, %v3087_v47  ;;  %vm3117_vm10 = vcmp.eq.f32.partialorder %v3111_v11, 0.0 }
 0x272   :  { %v3068_v31 = vsel %vm3066_vm8, %v3067_v19, %v3065_v59  ;;  %v3092_v40 = vadd.f32 1e-08, %v3090_v0 }
 0x273   :  { %3861 = vrsqrt.f32 %v3112_v42  ;;  %v3070_v56 = vadd.f32 1e-08, %v3068_v31  ;;  %vm3122_vm11 = vcmp.eq.f32.partialorder %v3112_v42, inf  ;;  %v3125_v18 = vand.u32 2147483648, %v3112_v42 }
 0x274   :  { %3863 = vrcp.f32 %v3091_v63  ;;  %vm3124_vm12 = vcmp.eq.f32.partialorder %v3112_v42, 0.0 }
 0x275   :  { %3865 = vrcp.f32 %v3069_v5 }
 0x276   :  { %3867 = vrcp.f32 %v3092_v40 }
 0x277   :  { %3869 = vrcp.f32 %v3070_v56 }
 0x278   :  { %3871 = vpow2.f32 %v3143_v61 }
 0x279   :  { %3873 = vpow2.f32 %v3145_v36 }
 0x27d   :  { %v3860_v30 = vpop.eup %3859 }
 0x27e   :  { %v3114_v55 = vmul.f32 %v3860_v30, %v3111_v11 }
 0x280   :  { %v3862_v21 = vpop.eup %3861  ;;  %v3116_v27 = vsel %vm3115_vm9, %v3111_v11, %v3114_v55 }
 0x281   :  { %v3864_v41 = vpop.eup %3863  ;;  %v3121_v46 = vmul.f32 %v3862_v21, %v3112_v42  ;;  %v3119_v62 = vsel %vm3117_vm10, %v3118_v12, %v3116_v27 }
 0x282   :  { %v3866_v54 = vpop.eup %3865  ;;  %v3103_v43 = vmul.f32 %v3864_v41, %v3864_v41 }
 0x283   :  { %v3868_v32 = vpop.eup %3867  ;;  %v3097_v16 = vmul.f32 %v3866_v54, %v3866_v54  ;;  %v3123_v14 = vsel %vm3122_vm11, %v3112_v42, %v3121_v46  ;;  %v3127_v53 = vmul.f32 %v3866_v54, %v3864_v41 }
 0x284   :  { %v3870_v38 = vpop.eup %3869  ;;  %v3104_v44 = vmul.f32 %v3868_v32, %v3868_v32  ;;  %v3105_v9 = vmul.f32 %v3103_v43, %v6029_v39  ;;  %v3126_v6 = vsel %vm3124_vm12, %v3125_v18, %v3123_v14  ;;  %v3187_v18 = vlaneseq }
 0x285   :  { %v3098_v24 = vmul.f32 %v3870_v38, %v3870_v38  ;;  %v3099_v22 = vmul.f32 %v3097_v16, %v6031_v50  ;;  %v3129_v13 = vmul.f32 %v3127_v53, %v3119_v62  ;;  %v3128_v1 = vmul.f32 %v3870_v38, %v3868_v32 }
 0x286   :  { %v3106_v37 = vmul.f32 %v3104_v44, %v6033_v51  ;;  %v3107_v39 = vmul.f32 %v3105_v9, %v6013_v34  ;;  %v3939_v53 = vmov 1966171168   ;;  %vm3201_vm1 = vcmp.lt.s32.totalorder %v3187_v18, 256 }
 0x287   :  { %v2281_v35 = vpop.f32.mrf.mxu0  ;;  %v3100_v47 = vmul.f32 %v3098_v24, %v6037_v10  ;;  %v3130_v4 = vmul.f32 %v3128_v1, %v3126_v6  ;;  %v3101_v19 = vmul.f32 %v3099_v22, %v6015_v15  ;;  %v3131_v0 = vmul.f32 2.0, %v3129_v13 }
 0x288   :  { %v3108_v63 = vmul.f32 %v3106_v37, %v6017_v23  ;;  %v3185_v24 = vunpack.c.l.s4 %v3939_v53  ;;  %v3178_v13 = vstv %s6059_s0 }
 0x289   :  { %v2283_v33 = vpop.f32.mrf.mxu0  ;;  %v3102_v51 = vmul.f32 %v3100_v47, %v6019_v17  ;;  %v3109_v5 = vadd.f32 %v3107_v39, %v3101_v19  ;;  %v3132_v10 = vmul.f32 2.0, %v3130_v4 }
 0x28a   :  { %v3186_v9 = vunpack.c.0.s8 %v3185_v24 }
 0x28b   :  { %v3110_v30 = vadd.f32 %v3108_v63, %v3102_v51 }
 0x28f   :  { %v2513_v49 = vpop.f32.mrf.mxu1 }
 0x290   :  { %v2514_v48 = vadd.f32 %v2513_v49, %v2281_v35  ;;  %v3872_v49 = vpop.eup %3871 }
 0x291   :  { %v2515_v52 = vpop.f32.mrf.mxu1  ;;  %v3874_v41 = vpop.eup %3873 }
 0x292   :  { %v2516_v25 = vadd.f32 %v2515_v52, %v2283_v33 }
 0x2c7   :  { %v2650_v60 = vpop.f32.mrf.mxu0 }
 0x2c8   :  { %v2651_v26 = vadd.f32 %v2650_v60, %v2514_v48 }
 0x2c9   :  { %v2652_v8 = vpop.f32.mrf.mxu0 }
 0x2ca   :  { %v2653_v7 = vadd.f32 %v2652_v8, %v2516_v25 }
 0x2cf   :  { %v2756_v29 = vpop.f32.mrf.mxu1 }
 0x2d0   :  { %v2757_v58 = vadd.f32 %v2756_v29, %v2651_v26 }
 0x2d1   :  { %v2758_v28 = vpop.f32.mrf.mxu1 }
 0x2d2   :  { %v2759_v3 = vadd.f32 %v2758_v28, %v2653_v7  ;;  %v3188_v28 = vshrl.u32 %v3187_v18, 7 }
 0x2d4   :  { %v3189_v37 = vsub.s32 %v3186_v9, %v3188_v28 }
 0x307   :  { %v2924_v57 = vpop.f32.mrf.mxu0 }
 0x308   :  { %v2925_v59 = vadd.f32 %v2924_v57, %v2757_v58 }
 0x309   :  { %v2926_v11 = vpop.f32.mrf.mxu0 }
 0x30a   :  { %v2927_v50 = vadd.f32 %v2926_v11, %v2759_v3 }
 0x30f   :  { %v3028_v2 = vpop.f32.mrf.mxu1 }
 0x310   :  { %v3029_v42 = vadd.f32 %v3028_v2, %v2925_v59 }
 0x311   :  { %v3030_v31 = vpop.f32.mrf.mxu1 }
 0x312   :  { %v3133_v40 = vmul.f32 %v3131_v0, %v3029_v42  ;;  %v3031_v56 = vadd.f32 %v3030_v31, %v2927_v50 }
 0x314   :  { %v3135_v35 = vsub.f32 %v3109_v5, %v3133_v40  ;;  %v3134_v21 = vmul.f32 %v3132_v10, %v3031_v56 }
 0x316   :  { %v3137_v34 = vmax.f32 %v3135_v35, 0.0  ;;  %v3136_v33 = vsub.f32 %v3110_v30, %v3134_v21 }
 0x318   :  { %v3139_v55 = vmul.f32 2.0, %v3137_v34  ;;  %v3138_v15 = vmax.f32 %v3136_v33, 0.0 }
 0x31a   :  { %v3147_v45 = vmul.f32 %v3872_v49, %v3139_v55  ;;  %v3140_v60 = vmul.f32 2.0, %v3138_v15 }
 0x31c   :  { %v3149_v54 = vadd.f32 1e-07, %v3147_v45  ;;  %v3148_v23 = vmul.f32 %v3874_v41, %v3140_v60 }
 0x31e   :  { %v3151_v46 = vadd.f32 2.0, %v3149_v54  ;;  %v3150_v32 = vadd.f32 1e-07, %v3148_v23 }
 0x320   :  { %v3153_v17 = vmul.f32 %v3151_v46, %v3149_v54  ;;  %v3152_v20 = vadd.f32 2.0, %v3150_v32 }
 0x322   :  { %3875 = vrsqrt.f32 %v3153_v17  ;;  %v3154_v52 = vmul.f32 %v3152_v20, %v3150_v32  ;;  %vm3157_vm13 = vcmp.eq.f32.partialorder %v3153_v17, inf  ;;  %v3160_v43 = vand.u32 2147483648, %v3153_v17 }
 0x323   :  { %vm3159_vm14 = vcmp.eq.f32.partialorder %v3153_v17, 0.0 }
 0x324   :  { %3877 = vrsqrt.f32 %v3154_v52  ;;  %vm3164_vm15 = vcmp.eq.f32.partialorder %v3154_v52, inf  ;;  %v3167_v48 = vand.u32 2147483648, %v3154_v52  ;;  %vm3166_vm0 = vcmp.eq.f32.partialorder %v3154_v52, 0.0 }
 0x32f   :  { %v3876_v27 = vpop.eup %3875 }
 0x330   :  { %v3156_v38 = vmul.f32 %v3876_v27, %v3153_v17 }
 0x331   :  { %v3878_v12 = vpop.eup %3877 }
 0x332   :  { %v3158_v61 = vsel %vm3157_vm13, %v3153_v17, %v3156_v38  ;;  %v3163_v29 = vmul.f32 %v3878_v12, %v3154_v52 }
 0x333   :  { %v3161_v8 = vsel %vm3159_vm14, %v3160_v43, %v3158_v61 }
 0x334   :  { %v3169_v16 = vadd.f32 %v3161_v8, %v3149_v54  ;;  %v3165_v62 = vsel %vm3164_vm15, %v3154_v52, %v3163_v29 }
 0x335   :  { %v3168_v14 = vsel %vm3166_vm0, %v3167_v48, %v3165_v62 }
 0x336   :  { %v3171_v44 = vadd.f32 1.0, %v3169_v16  ;;  %v3170_v36 = vadd.f32 %v3168_v14, %v3150_v32 }
 0x338   :  { %3879 = vlog2.f32 %v3171_v44  ;;  %v3172_v57 = vadd.f32 1.0, %v3170_v36 }
 0x33a   :  { %3881 = vlog2.f32 %v3172_v57 }
 0x345   :  { %v3880_v25 = vpop.eup %3879 }
 0x346   :  { %v3174_v26 = vmul.f32 0.6931472, %v3880_v25 }
 0x347   :  { %v3882_v22 = vpop.eup %3881 }
 0x348   :  { %v3176_v6 = vmul.f32 0.6931472, %v3882_v22  ;;  %v3179_v7 = vmul.f32 %v3178_v13, %v3174_v26 }
 0x34a   :  { %v3180_v58 = vmul.f32 %v3178_v13, %v3176_v6 }
 0x34c   :  { %v3183_v1 = vcombine.low %v3179_v7, %v3180_v58 }
 0x34e   :  { %v3190_v11 = vrot.slane %v3183_v1, %v3189_v37 }
 0x350   :  { %v3197_v47 = vrot.slane %v3190_v11, %v3189_v37 }
 0x352   :  { %3203 = vst.msk [vmem:[#allocation3] sm:$0x3] %vm3201_vm1, %v3197_v47 }
 0x353   :  { %3926 = shalt.err (!%p3923_p4)
}
 0x354   :  { %3213 = dma.vmem_to_hbm [thread:$0]  %s3211_s14, 32, %s6062_s3, [#allocation4]  }
 0x355   :  { %3935 = dma.done.wait [#allocation4], 32  }
 0x356   :  { %3936 = vsyncadd [#allocation4], 4294967264 }
 0x357   :  { %3217 = vsyncpa [#allocation4], 1 }

</bundles_post_ra>
